<compile_context>
chip_gen: v7x
topology: tpu7x:2x2x1
jax: 0.10.0
libtpu: 0.0.40
codegen_flags: <defaults>
</compile_context>

<pallas_src>
import functools
import numpy as np
import jax
import jax.numpy as jnp
from jax import lax
from jax.experimental import pallas as pl
from jax.experimental.pallas import tpu as pltpu

# Full-f32 matmul accumulation for both the kernel trace and the pure-JAX
# reference so the correctness check is tight.
jax.config.update("jax_default_matmul_precision", "highest")


# ----------------------- configuration (mirrors `args`) ----------------------
class Args:
    n_embd = 32
    dim_att = 32
    dim_rk = 32
    dim_v = 32
    head_size = 16
    n_head = 2            # dim_att // head_size
    n_kv_head = 2         # == n_head here, so no GQA repeat needed
    head_size_divisor = 8.0
    n_layer = 4
    dtype = jnp.float32


LAYER_ID = 1
GN_EPS = 1e-5               # PyTorch GroupNorm default
MXU_DTYPE = jnp.float32     # set to jnp.bfloat16 on v6e/v7x for full MXU rate


# --------------------------- fused TimeMix kernel -----------------------------
def _timemix_kernel(x_ref, wcur_ref, wprev_ref, logw_ref, u_ref, s0_ref,
                    gamma_ref, beta_ref, wo_ref,
                    o_ref, sout_ref, proj_ref, *,
                    T, K, V, TC, divisor, eps, mxu_dtype):
    """One grid point == one (batch b, head h) pair.

    grid = (B, H): axis 0 "parallel" (shards batches across TensorCores),
    axis 1 "arbitrary" (the (T, C) output block stays resident and accumulates
    per-head contributions).
    """
    h = pl.program_id(1)
    num_chunks = T // TC
    md = mxu_dtype

    # ---- time shift xx[t] = x[t-1] (0 at t==0): XLU roll + VPU mask ---------
    x = x_ref[...]                                            # (T, C) f32
    xx = pltpu.roll(x, shift=1, axis=0)                       # xx[t] = x[(t-1) % T]
    row0 = lax.broadcasted_iota(jnp.int32, x.shape, 0) == 0
    xx = jnp.where(row0, 0.0, xx)

    # ---- folded time-mix projections for this head, r|k|v|g concatenated ----
    #   (x*m + xx*(1-m)) @ W  ==  x @ (m*W) + xx @ ((1-m)*W)
    proj_ref[...] = (
        jnp.dot(x.astype(md), wcur_ref[...].astype(md),
                preferred_element_type=jnp.float32)
        + jnp.dot(xx.astype(md), wprev_ref[...].astype(md),
                  preferred_element_type=jnp.float32))        # (T, 2K+2V)

    # ---- output block shared across the (arbitrary) head axis ---------------
    @pl.when(h == 0)
    def _init():
        o_ref[...] = jnp.zeros_like(o_ref)

    logw = logw_ref[...]                                      # (1, K), log w < 0
    u_row = u_ref[...]                                        # (1, K)
    gamma = gamma_ref[...]                                    # (1, V)
    beta = beta_ref[...]                                      # (1, V)
    wo = wo_ref[...].astype(md)                               # (V, C)

    # ---- chunk-local decay powers, hoisted out of the chunk loop ------------
    tt = lax.broadcasted_iota(jnp.int32, (TC, K), 0).astype(jnp.float32)
    wpow = jnp.exp(tt * logw)                 # w^t
    winv = jnp.exp(-(tt + 1.0) * logw)        # w^{-(t+1)}  (bounded by TC)
    wrem = jnp.exp((TC - 1.0 - tt) * logw)    # w^{TC-1-t}
    # diag(w^TC) as a tiny (K, K) matrix: decays the carried state without a
    # (1,K)->(K,1) relayout and without an extra column-major logw input.
    dr = lax.broadcasted_iota(jnp.int32, (K, K), 0)
    dc = lax.broadcasted_iota(jnp.int32, (K, K), 1)
    decay_kk = jnp.where(dr == dc, jnp.exp(float(TC) * logw), 0.0)  # f32

    tri_r = lax.broadcasted_iota(jnp.int32, (TC, TC), 0)
    tri_c = lax.broadcasted_iota(jnp.int32, (TC, TC), 1)
    inv_div = 1.0 / divisor

    def chunk_body(c, state):                 # state: (K, V) f32 carry
        rs = pl.multiple_of(c * TC, TC)
        pc = proj_ref[pl.ds(rs, TC), :]       # (TC, 2K+2V)
        r_c = pc[:, 0:K]
        k_c = pc[:, K:2 * K]
        v_c = pc[:, 2 * K:2 * K + V]
        g_c = pc[:, 2 * K + V:2 * K + 2 * V]

        # intra-chunk decayed scores: s[t, tau] = sum_k r_t w^{t-tau-1} k_tau
        rp = r_c * wpow
        kp = k_c * winv
        s_mat = lax.dot_general(rp.astype(md), kp.astype(md),
                                (((1,), (1,)), ((), ())),
                                preferred_element_type=jnp.float32)   # (TC, TC)
        d_col = jnp.sum(r_c * u_row * k_c, axis=-1, keepdims=True)    # (TC, 1)
        scores = jnp.where(tri_c < tri_r, s_mat,
                           jnp.where(tri_c == tri_r, d_col, 0.0))
        out_c = (jnp.dot(scores.astype(md), v_c.astype(md),
                         preferred_element_type=jnp.float32)
                 + jnp.dot(rp.astype(md), state.astype(md),
                           preferred_element_type=jnp.float32))       # (TC, V)

        # carried state: w^TC * state + sum_t w^{TC-1-t} k_t^T v_t  (kept f32;
        # time axis contracted directly -> no explicit transpose)
        new_state = (
            jnp.dot(decay_kk, state, preferred_element_type=jnp.float32)
            + lax.dot_general(k_c * wrem, v_c, (((0,), (0,)), ((), ())),
                              preferred_element_type=jnp.float32))

        # GroupNorm (one group == one head) + SiLU gate + per-head slice of the
        # output projection, accumulated straight into the shared (T, C) block.
        y = out_c * inv_div
        mean = jnp.mean(y, axis=-1, keepdims=True)
        var = jnp.mean(jnp.square(y - mean), axis=-1, keepdims=True)
        gn = (y - mean) * lax.rsqrt(var + eps) * gamma + beta
        gated = gn * (g_c * jax.nn.sigmoid(g_c))
        contrib = jnp.dot(gated.astype(md), wo,
                          preferred_element_type=jnp.float32)         # (TC, C)
        o_ref[pl.ds(rs, TC), :] += contrib
        return new_state

    final_state = lax.fori_loop(0, num_chunks, chunk_body, s0_ref[...],
                                unroll=True)
    sout_ref[...] = final_state


# ------------------------------ parameter init --------------------------------
def init_params(args, layer_id, key):
    C, A = args.n_embd, args.dim_att
    H, K = args.n_head, args.head_size
    ratio_0_to_1 = layer_id / (args.n_layer - 1)
    ratio_1_to_almost0 = 1.0 - layer_id / args.n_layer

    i = np.arange(C, dtype=np.float64) / C
    tm_k = np.power(i, ratio_1_to_almost0)
    tm_v = np.power(i, ratio_1_to_almost0) + 0.3 * ratio_0_to_1
    tm_r = np.power(i, 0.5 * ratio_1_to_almost0)
    tm_g = np.power(i, 0.5 * ratio_1_to_almost0)

    n = np.arange(A, dtype=np.float64)
    decay_speed = -6 + 5 * (n / (A - 1)) ** (0.7 + 1.3 * ratio_0_to_1)
    zigzag = ((n + 1) % 3 - 1) * 0.1
    time_faaaa = ratio_0_to_1 * (1 - n / (A - 1)) + zigzag

    ks = jax.random.split(key, 5)
    lin = lambda k, cin, cout: 0.02 * jax.random.normal(k, (cin, cout), jnp.float32)
    return dict(
        time_mix_k=jnp.asarray(tm_k, jnp.float32).reshape(1, 1, C),
        time_mix_v=jnp.asarray(tm_v, jnp.float32).reshape(1, 1, C),
        time_mix_r=jnp.asarray(tm_r, jnp.float32).reshape(1, 1, C),
        time_mix_g=jnp.asarray(tm_g, jnp.float32).reshape(1, 1, C),
        time_decay=jnp.asarray(decay_speed, jnp.float32).reshape(H, K),
        time_faaaa=jnp.asarray(time_faaaa, jnp.float32).reshape(H, K),
        w_r=lin(ks[0], C, A), w_k=lin(ks[1], C, A), w_v=lin(ks[2], C, A),
        w_g=lin(ks[3], C, A), w_o=lin(ks[4], A, C),
        gn_gamma=jnp.ones((A,), jnp.float32),
        gn_beta=jnp.zeros((A,), jnp.float32),
    )


# -------------------------------- TimeMix forward -----------------------------
def timemix_forward(params, x, args, state=None, *, chunk_len=8,
                    mxu_dtype=MXU_DTYPE):
    B, T, C = x.shape
    H = args.n_head
    K = args.dim_rk // H
    V = args.dim_v // H
    # TODO(synk): GQA repeat path (n_kv_head < n_head) not implemented; config
    # has n_kv_head == n_head so it is not exercised here.
    assert args.n_kv_head == H
    TC = min(chunk_len, T)
    assert T % TC == 0, "sequence length must be a multiple of the time chunk"
    P4 = 2 * K + 2 * V
    f32 = jnp.float32

    mr = params['time_mix_r'].reshape(C)
    mk = params['time_mix_k'].reshape(C)
    mv = params['time_mix_v'].reshape(C)
    mg = params['time_mix_g'].reshape(C)

    def per_head(mix, w):                     # (C,), (C, H*d) -> (H, C, d)
        return (mix[:, None] * w).reshape(C, H, -1).transpose(1, 0, 2)

    # time-mix coefficients folded into per-head, concatenated r|k|v|g weights
    w_cur = jnp.concatenate(
        [per_head(mr, params['w_r']), per_head(mk, params['w_k']),
         per_head(mv, params['w_v']), per_head(mg, params['w_g'])], axis=-1)
    w_prev = jnp.concatenate(
        [per_head(1.0 - mr, params['w_r']), per_head(1.0 - mk, params['w_k']),
         per_head(1.0 - mv, params['w_v']), per_head(1.0 - mg, params['w_g'])],
        axis=-1)                              # (H, C, 2K+2V)

    logw = (-jnp.exp(params['time_decay'].astype(f32))).reshape(H, 1, K)
    u = params['time_faaaa'].astype(f32).reshape(H, 1, K)
    gamma = params['gn_gamma'].astype(f32).reshape(H, 1, V)
    beta = params['gn_beta'].astype(f32).reshape(H, 1, V)
    w_o = params['w_o'].astype(f32).reshape(H, V, C)

    if state is None:
        state = jnp.zeros((B, H, K, V), f32)
    s0 = state.astype(f32)

    kernel = functools.partial(
        _timemix_kernel, T=T, K=K, V=V, TC=TC,
        divisor=float(args.head_size_divisor), eps=GN_EPS, mxu_dtype=mxu_dtype)

    # explicit VMEM budget: double-buffered per-(b,h) blocks + proj scratch,
    # with generous headroom (stays far below v7x's 64 MiB physical VMEM).
    per_point = (T * C + 2 * C * P4 + 2 * K + 2 * V + K * V + V * C   # inputs
                 + T * C + K * V                                      # outputs
                 + T * P4)                                            # scratch
    vmem_limit = int(min(64 << 20, max(8 << 20, 8 * per_point * 4)))

    o, s_out = pl.pallas_call(
        kernel,
        grid=(B, H),
        in_specs=[
            pl.BlockSpec((None, T, C), lambda b, h: (b, 0, 0)),           # x
            pl.BlockSpec((None, C, P4), lambda b, h: (h, 0, 0)),          # w_cur
            pl.BlockSpec((None, C, P4), lambda b, h: (h, 0, 0)),          # w_prev
            pl.BlockSpec((None, 1, K), lambda b, h: (h, 0, 0)),           # logw
            pl.BlockSpec((None, 1, K), lambda b, h: (h, 0, 0)),           # u
            pl.BlockSpec((None, None, K, V), lambda b, h: (b, h, 0, 0)),  # s0
            pl.BlockSpec((None, 1, V), lambda b, h: (h, 0, 0)),           # gamma
            pl.BlockSpec((None, 1, V), lambda b, h: (h, 0, 0)),           # beta
            pl.BlockSpec((None, V, C), lambda b, h: (h, 0, 0)),           # w_o
        ],
        out_specs=[
            pl.BlockSpec((None, T, C), lambda b, h: (b, 0, 0)),           # out
            pl.BlockSpec((None, None, K, V), lambda b, h: (b, h, 0, 0)),  # state
        ],
        out_shape=[jax.ShapeDtypeStruct((B, T, C), f32),
                   jax.ShapeDtypeStruct((B, H, K, V), f32)],
        scratch_shapes=[pltpu.VMEM((T, P4), f32)],
        compiler_params=pltpu.CompilerParams(
            dimension_semantics=("parallel", "arbitrary"),
            vmem_limit_bytes=vmem_limit),
    )(x.astype(f32), w_cur, w_prev, logw, u, s0, gamma, beta, w_o)

    return o.astype(args.dtype), s_out


# -------------------------- pure-JAX reference (check) ------------------------
def timemix_reference(params, x, args, state=None):
    B, T, C = x.shape
    H = args.n_head
    K = args.dim_rk // H
    V = args.dim_v // H
    xx = jnp.concatenate([jnp.zeros((B, 1, C), x.dtype), x[:, :-1, :]], axis=1)
    kx = x * params['time_mix_k'] + xx * (1 - params['time_mix_k'])
    vx = x * params['time_mix_v'] + xx * (1 - params['time_mix_v'])
    rx = x * params['time_mix_r'] + xx * (1 - params['time_mix_r'])
    gx = x * params['time_mix_g'] + xx * (1 - params['time_mix_g'])

    r = (rx.reshape(B * T, C) @ params['w_r']).reshape(B, T, H, K).transpose(0, 2, 1, 3)
    k = (kx.reshape(B * T, C) @ params['w_k']).reshape(B, T, H, K).transpose(0, 2, 1, 3)
    v = (vx.reshape(B * T, C) @ params['w_v']).reshape(B, T, H, V).transpose(0, 2, 1, 3)
    g_raw = gx.reshape(B * T, C) @ params['w_g']

    if state is None:
        state = jnp.zeros((B, H, K, V), jnp.float32)
    state = state.astype(jnp.float32)
    w = jnp.exp(-jnp.exp(params['time_decay']))
    u = params['time_faaaa']

    outs = []
    for t in range(T):
        rt, kt, vt = r[:, :, t, :], k[:, :, t, :], v[:, :, t, :]
        kv = kt[..., :, None] * vt[..., None, :]                     # (B,H,K,V)
        outs.append(jnp.einsum('bhk,bhkv->bhv',
                               rt, state + u[None, :, :, None] * kv))
        state = w[None, :, :, None] * state + kv
    out = jnp.stack(outs, axis=2)                                    # (B,H,T,V)

    y = out.transpose(0, 2, 1, 3).reshape(B * T, H * V) / args.head_size_divisor
    yh = y.reshape(B * T, H, V)
    mean = yh.mean(-1, keepdims=True)
    var = ((yh - mean) ** 2).mean(-1, keepdims=True)
    norm = ((yh - mean) / jnp.sqrt(var + GN_EPS)).reshape(B * T, H * V)
    ln = norm * params['gn_gamma'] + params['gn_beta']
    g = g_raw * jax.nn.sigmoid(g_raw)
    o = ((ln * g) @ params['w_o']).reshape(B, T, C)
    return o, state


# ----------------------------------- main --------------------------------------
if __name__ == "__main__":
    args = Args()
    key = jax.random.PRNGKey(0)
    k_param, k_x, k_s = jax.random.split(key, 3)
    params = init_params(args, LAYER_ID, k_param)

    B, T = 2, 16   # T=16 with chunk_len=8 exercises the cross-chunk state carry
    x = jax.random.normal(k_x, (B, T, args.n_embd), jnp.float32)
    s_init = 0.5 * jax.random.normal(
        k_s, (B, args.n_head, args.head_size, args.head_size), jnp.float32)

    # with an explicit initial recurrent state
    out, state = timemix_forward(params, x, args, state=s_init)
    out = jax.block_until_ready(out)
    state = jax.block_until_ready(state)
    ref_out, ref_state = timemix_reference(params, x, args, state=s_init)
    np.testing.assert_allclose(np.asarray(out), np.asarray(ref_out),
                               rtol=1e-4, atol=1e-5)
    np.testing.assert_allclose(np.asarray(state), np.asarray(ref_state),
                               rtol=1e-4, atol=1e-5)

    # default path (state=None -> zeros)
    out0, state0 = timemix_forward(params, x, args)
    out0 = jax.block_until_ready(out0)
    state0 = jax.block_until_ready(state0)
    ref_out0, ref_state0 = timemix_reference(params, x, args)
    np.testing.assert_allclose(np.asarray(out0), np.asarray(ref_out0),
                               rtol=1e-4, atol=1e-5)
    np.testing.assert_allclose(np.asarray(state0), np.asarray(ref_state0),
                               rtol=1e-4, atol=1e-5)

    print("KERNEL_OK")
</pallas_src>

<mosaic_0001>
module attributes {stable_mosaic.version = 11 : i64} {
  func.func @_timemix_kernel(%arg0: i32, %arg1: i32, %arg2: memref<1x16x32xf32, #tpu.memory_space<vmem>>, %arg3: memref<1x32x64xf32, #tpu.memory_space<vmem>>, %arg4: memref<1x32x64xf32, #tpu.memory_space<vmem>>, %arg5: memref<1x1x16xf32, #tpu.memory_space<vmem>>, %arg6: memref<1x1x16xf32, #tpu.memory_space<vmem>>, %arg7: memref<1x1x16x16xf32, #tpu.memory_space<vmem>>, %arg8: memref<1x1x16xf32, #tpu.memory_space<vmem>>, %arg9: memref<1x1x16xf32, #tpu.memory_space<vmem>>, %arg10: memref<1x16x32xf32, #tpu.memory_space<vmem>>, %arg11: memref<1x16x32xf32, #tpu.memory_space<vmem>>, %arg12: memref<1x1x16x16xf32, #tpu.memory_space<vmem>>, %arg13: memref<16x64xf32, #tpu.memory_space<vmem>>) attributes {dimension_semantics = [#tpu.dimension_semantics<parallel>, #tpu.dimension_semantics<arbitrary>], iteration_bounds = array<i64: 2, 2>, scalar_prefetch = 0 : i64, scratch_operands = 1 : i64, tpu.core_type = #tpu.core_type<tc>, window_params = [{transform_indices = @transform_0, window_bounds = array<i64: 1, 16, 32>}, {transform_indices = @transform_1, window_bounds = array<i64: 1, 32, 64>}, {transform_indices = @transform_2, window_bounds = array<i64: 1, 32, 64>}, {transform_indices = @transform_3, window_bounds = array<i64: 1, 1, 16>}, {transform_indices = @transform_4, window_bounds = array<i64: 1, 1, 16>}, {transform_indices = @transform_5, window_bounds = array<i64: 1, 1, 16, 16>}, {transform_indices = @transform_6, window_bounds = array<i64: 1, 1, 16>}, {transform_indices = @transform_7, window_bounds = array<i64: 1, 1, 16>}, {transform_indices = @transform_8, window_bounds = array<i64: 1, 16, 32>}, {transform_indices = @transform_9, window_bounds = array<i64: 1, 16, 32>}, {transform_indices = @transform_10, window_bounds = array<i64: 1, 1, 16, 16>}]} {
    %c0 = arith.constant 0 : index
    %c0_0 = arith.constant 0 : index
    %c0_1 = arith.constant 0 : index
    %0 = vector.load %arg2[%c0, %c0_0, %c0_1] : memref<1x16x32xf32, #tpu.memory_space<vmem>>, vector<1x16x32xf32>
    %1 = vector.shape_cast %0 : vector<1x16x32xf32> to vector<16x32xf32>
    %c1_i32 = arith.constant 1 : i32
    %2 = tpu.dynamic_rotate %1 by %c1_i32 dim 0 : vector<16x32xf32>, i32 -> vector<16x32xf32>
    %3 = tpu.iota {dimensions = array<i32: 0>} : vector<16x32xi32>
    %c0_i32 = arith.constant 0 : i32
    %4 = vector.broadcast %c0_i32 : i32 to vector<16x32xi32>
    %5 = arith.cmpi eq, %3, %4 : vector<16x32xi32>
    %cst = arith.constant 0.000000e+00 : f32
    %6 = vector.broadcast %cst : f32 to vector<16x32xf32>
    %7 = arith.select %5, %6, %2 : vector<16x32xi1>, vector<16x32xf32>
    %c0_2 = arith.constant 0 : index
    %c0_3 = arith.constant 0 : index
    %c0_4 = arith.constant 0 : index
    %8 = vector.load %arg3[%c0_2, %c0_3, %c0_4] : memref<1x32x64xf32, #tpu.memory_space<vmem>>, vector<1x32x64xf32>
    %9 = vector.shape_cast %8 : vector<1x32x64xf32> to vector<32x64xf32>
    %cst_5 = arith.constant dense<0.000000e+00> : vector<16x64xf32>
    %10 = tpu.matmul %1, %9, %cst_5 {dimension_numbers = #tpu.dot_dimension_numbers<[1], [0], [0], [1], [0, 0, 1, 1], [], []>, precision = #tpu.contract_precision<fp32>} : vector<16x32xf32>, vector<32x64xf32>, vector<16x64xf32> -> vector<16x64xf32>
    %c0_6 = arith.constant 0 : index
    %c0_7 = arith.constant 0 : index
    %c0_8 = arith.constant 0 : index
    %11 = vector.load %arg4[%c0_6, %c0_7, %c0_8] : memref<1x32x64xf32, #tpu.memory_space<vmem>>, vector<1x32x64xf32>
    %12 = vector.shape_cast %11 : vector<1x32x64xf32> to vector<32x64xf32>
    %cst_9 = arith.constant dense<0.000000e+00> : vector<16x64xf32>
    %13 = tpu.matmul %7, %12, %cst_9 {dimension_numbers = #tpu.dot_dimension_numbers<[1], [0], [0], [1], [0, 0, 1, 1], [], []>, precision = #tpu.contract_precision<fp32>} : vector<16x32xf32>, vector<32x64xf32>, vector<16x64xf32> -> vector<16x64xf32>
    %14 = arith.addf %10, %13 : vector<16x64xf32>
    %c0_10 = arith.constant 0 : index
    %c0_11 = arith.constant 0 : index
    %15 = vector.load %arg13[%c0_10, %c0_11] : memref<16x64xf32, #tpu.memory_space<vmem>>, vector<16x64xf32>
    tpu.vector_store %arg13[%c0_10, %c0_11], %14 {strides = array<i32>} : memref<16x64xf32, #tpu.memory_space<vmem>>, vector<16x64xf32>,
    %c0_i32_12 = arith.constant 0 : i32
    %16 = arith.cmpi eq, %arg1, %c0_i32_12 : i32
    %17 = arith.extui %16 : i1 to i32
    %c0_i32_13 = arith.constant 0 : i32
    %18 = arith.cmpi ne, %17, %c0_i32_13 : i32
    scf.if %18 {
      %cst_85 = arith.constant 0.000000e+00 : f32
      %203 = vector.broadcast %cst_85 : f32 to vector<16x32xf32>
      %c0_86 = arith.constant 0 : index
      %c0_87 = arith.constant 0 : index
      %c0_88 = arith.constant 0 : index
      %204 = vector.load %arg11[%c0_86, %c0_87, %c0_88] : memref<1x16x32xf32, #tpu.memory_space<vmem>>, vector<1x16x32xf32>
      %205 = vector.shape_cast %204 : vector<1x16x32xf32> to vector<16x32xf32>
      %206 = vector.shape_cast %203 : vector<16x32xf32> to vector<1x16x32xf32>
      tpu.vector_store %arg11[%c0_86, %c0_87, %c0_88], %206 {strides = array<i32>} : memref<1x16x32xf32, #tpu.memory_space<vmem>>, vector<1x16x32xf32>,
    } else {
    }
    %c0_14 = arith.constant 0 : index
    %c0_15 = arith.constant 0 : index
    %c0_16 = arith.constant 0 : index
    %19 = vector.load %arg5[%c0_14, %c0_15, %c0_16] : memref<1x1x16xf32, #tpu.memory_space<vmem>>, vector<1x1x16xf32>
    %20 = vector.shape_cast %19 : vector<1x1x16xf32> to vector<1x16xf32>
    %c0_17 = arith.constant 0 : index
    %c0_18 = arith.constant 0 : index
    %c0_19 = arith.constant 0 : index
    %21 = vector.load %arg6[%c0_17, %c0_18, %c0_19] : memref<1x1x16xf32, #tpu.memory_space<vmem>>, vector<1x1x16xf32>
    %22 = vector.shape_cast %21 : vector<1x1x16xf32> to vector<1x16xf32>
    %c0_20 = arith.constant 0 : index
    %c0_21 = arith.constant 0 : index
    %c0_22 = arith.constant 0 : index
    %23 = vector.load %arg8[%c0_20, %c0_21, %c0_22] : memref<1x1x16xf32, #tpu.memory_space<vmem>>, vector<1x1x16xf32>
    %24 = vector.shape_cast %23 : vector<1x1x16xf32> to vector<1x16xf32>
    %c0_23 = arith.constant 0 : index
    %c0_24 = arith.constant 0 : index
    %c0_25 = arith.constant 0 : index
    %25 = vector.load %arg9[%c0_23, %c0_24, %c0_25] : memref<1x1x16xf32, #tpu.memory_space<vmem>>, vector<1x1x16xf32>
    %26 = vector.shape_cast %25 : vector<1x1x16xf32> to vector<1x16xf32>
    %c0_26 = arith.constant 0 : index
    %c0_27 = arith.constant 0 : index
    %c0_28 = arith.constant 0 : index
    %27 = vector.load %arg10[%c0_26, %c0_27, %c0_28] : memref<1x16x32xf32, #tpu.memory_space<vmem>>, vector<1x16x32xf32>
    %28 = vector.shape_cast %27 : vector<1x16x32xf32> to vector<16x32xf32>
    %29 = tpu.iota {dimensions = array<i32: 0>} : vector<8x16xi32>
    %30 = arith.sitofp %29 : vector<8x16xi32> to vector<8x16xf32>
    %31 = vector.broadcast %20 : vector<1x16xf32> to vector<8x16xf32>
    %32 = arith.mulf %30, %31 : vector<8x16xf32>
    %33 = math.exp %32 : vector<8x16xf32>
    %cst_29 = arith.constant 1.000000e+00 : f32
    %34 = vector.broadcast %cst_29 : f32 to vector<8x16xf32>
    %35 = arith.addf %30, %34 : vector<8x16xf32>
    %cst_30 = arith.constant 0.000000e+00 : f32
    %36 = vector.broadcast %cst_30 : f32 to vector<8x16xf32>
    %37 = arith.subf %36, %35 : vector<8x16xf32>
    %38 = vector.broadcast %20 : vector<1x16xf32> to vector<8x16xf32>
    %39 = arith.mulf %37, %38 : vector<8x16xf32>
    %40 = math.exp %39 : vector<8x16xf32>
    %cst_31 = arith.constant 7.000000e+00 : f32
    %41 = vector.broadcast %cst_31 : f32 to vector<8x16xf32>
    %42 = arith.subf %41, %30 : vector<8x16xf32>
    %43 = vector.broadcast %20 : vector<1x16xf32> to vector<8x16xf32>
    %44 = arith.mulf %42, %43 : vector<8x16xf32>
    %45 = math.exp %44 : vector<8x16xf32>
    %46 = tpu.iota {dimensions = array<i32: 0>} : vector<16x16xi32>
    %47 = tpu.iota {dimensions = array<i32: 1>} : vector<16x16xi32>
    %48 = arith.cmpi eq, %46, %47 : vector<16x16xi32>
    %cst_32 = arith.constant 8.000000e+00 : f32
    %49 = vector.broadcast %cst_32 : f32 to vector<1x16xf32>
    %50 = arith.mulf %49, %20 : vector<1x16xf32>
    %51 = math.exp %50 : vector<1x16xf32>
    %cst_33 = arith.constant 0.000000e+00 : f32
    %52 = vector.shape_cast %51 : vector<1x16xf32> to vector<1x16xf32>
    %53 = vector.broadcast %52 : vector<1x16xf32> to vector<16x16xf32>
    %54 = vector.broadcast %cst_33 : f32 to vector<16x16xf32>
    %55 = arith.select %48, %53, %54 : vector<16x16xi1>, vector<16x16xf32>
    %56 = tpu.iota {dimensions = array<i32: 0>} : vector<8x8xi32>
    %57 = tpu.iota {dimensions = array<i32: 1>} : vector<8x8xi32>
    %c0_34 = arith.constant 0 : index
    %c0_35 = arith.constant 0 : index
    %c0_36 = arith.constant 0 : index
    %c0_37 = arith.constant 0 : index
    %58 = vector.load %arg7[%c0_34, %c0_35, %c0_36, %c0_37] : memref<1x1x16x16xf32, #tpu.memory_space<vmem>>, vector<1x1x16x16xf32>
    %59 = vector.shape_cast %58 : vector<1x1x16x16xf32> to vector<16x16xf32>
    %c0_i32_38 = arith.constant 0 : i32
    %c8_i32 = arith.constant 8 : i32
    %60 = arith.muli %c0_i32_38, %c8_i32 : i32
    %61 = tpu.assume_multiple %60, 8 : i32
    %62 = arith.index_cast %61 : i32 to index
    %c0_39 = arith.constant 0 : index
    %63 = vector.load %arg13[%62, %c0_39] : memref<16x64xf32, #tpu.memory_space<vmem>>, vector<8x64xf32>
    %64 = vector.extract_strided_slice %63 {offsets = [0, 0], sizes = [8, 16], strides = [1, 1]} : vector<8x64xf32> to vector<8x16xf32>
    %65 = vector.extract_strided_slice %63 {offsets = [0, 16], sizes = [8, 16], strides = [1, 1]} : vector<8x64xf32> to vector<8x16xf32>
    %66 = vector.extract_strided_slice %63 {offsets = [0, 32], sizes = [8, 16], strides = [1, 1]} : vector<8x64xf32> to vector<8x16xf32>
    %67 = vector.extract_strided_slice %63 {offsets = [0, 48], sizes = [8, 16], strides = [1, 1]} : vector<8x64xf32> to vector<8x16xf32>
    %68 = arith.mulf %64, %33 : vector<8x16xf32>
    %69 = arith.mulf %65, %40 : vector<8x16xf32>
    %cst_40 = arith.constant dense<0.000000e+00> : vector<8x8xf32>
    %70 = tpu.matmul %68, %69, %cst_40 {dimension_numbers = #tpu.dot_dimension_numbers<[1], [1], [0], [0], [0, 0, 1, 0], [], []>, precision = #tpu.contract_precision<fp32>} : vector<8x16xf32>, vector<8x16xf32>, vector<8x8xf32> -> vector<8x8xf32>
    %71 = vector.broadcast %22 : vector<1x16xf32> to vector<8x16xf32>
    %72 = arith.mulf %64, %71 : vector<8x16xf32>
    %73 = arith.mulf %72, %65 : vector<8x16xf32>
    %cst_41 = arith.constant dense<0.000000e+00> : vector<8xf32>
    %74 = vector.multi_reduction <add>, %73, %cst_41 [1] : vector<8x16xf32> to vector<8xf32>
    %75 = vector.shape_cast %74 : vector<8xf32> to vector<8x1xf32>
    %76 = arith.cmpi slt, %57, %56 : vector<8x8xi32>
    %77 = arith.cmpi eq, %57, %56 : vector<8x8xi32>
    %cst_42 = arith.constant 0.000000e+00 : f32
    %78 = vector.shape_cast %75 : vector<8x1xf32> to vector<8x1xf32>
    %79 = vector.broadcast %78 : vector<8x1xf32> to vector<8x8xf32>
    %80 = vector.broadcast %cst_42 : f32 to vector<8x8xf32>
    %81 = arith.select %77, %79, %80 : vector<8x8xi1>, vector<8x8xf32>
    %82 = arith.select %76, %70, %81 : vector<8x8xi1>, vector<8x8xf32>
    %cst_43 = arith.constant dense<0.000000e+00> : vector<8x16xf32>
    %83 = tpu.matmul %82, %66, %cst_43 {dimension_numbers = #tpu.dot_dimension_numbers<[1], [0], [0], [1], [0, 0, 1, 1], [], []>, precision = #tpu.contract_precision<fp32>} : vector<8x8xf32>, vector<8x16xf32>, vector<8x16xf32> -> vector<8x16xf32>
    %cst_44 = arith.constant dense<0.000000e+00> : vector<8x16xf32>
    %84 = tpu.matmul %68, %59, %cst_44 {dimension_numbers = #tpu.dot_dimension_numbers<[1], [0], [0], [1], [0, 0, 1, 1], [], []>, precision = #tpu.contract_precision<fp32>} : vector<8x16xf32>, vector<16x16xf32>, vector<8x16xf32> -> vector<8x16xf32>
    %85 = arith.addf %83, %84 : vector<8x16xf32>
    %cst_45 = arith.constant dense<0.000000e+00> : vector<16x16xf32>
    %86 = tpu.matmul %55, %59, %cst_45 {dimension_numbers = #tpu.dot_dimension_numbers<[1], [0], [0], [1], [0, 0, 1, 1], [], []>, precision = #tpu.contract_precision<fp32>} : vector<16x16xf32>, vector<16x16xf32>, vector<16x16xf32> -> vector<16x16xf32>
    %87 = arith.mulf %65, %45 : vector<8x16xf32>
    %cst_46 = arith.constant dense<0.000000e+00> : vector<16x16xf32>
    %88 = tpu.matmul %87, %66, %cst_46 {dimension_numbers = #tpu.dot_dimension_numbers<[0], [0], [1], [1], [0, 1, 1, 1], [], []>, precision = #tpu.contract_precision<fp32>} : vector<8x16xf32>, vector<8x16xf32>, vector<16x16xf32> -> vector<16x16xf32>
    %89 = arith.addf %86, %88 : vector<16x16xf32>
    %cst_47 = arith.constant 1.250000e-01 : f32
    %90 = vector.broadcast %cst_47 : f32 to vector<8x16xf32>
    %91 = arith.mulf %85, %90 : vector<8x16xf32>
    %cst_48 = arith.constant dense<0.000000e+00> : vector<8xf32>
    %92 = vector.multi_reduction <add>, %91, %cst_48 [1] : vector<8x16xf32> to vector<8xf32>
    %93 = vector.shape_cast %92 : vector<8xf32> to vector<8x1xf32>
    %cst_49 = arith.constant 1.600000e+01 : f32
    %94 = vector.broadcast %cst_49 : f32 to vector<8x1xf32>
    %95 = arith.divf %93, %94 : vector<8x1xf32>
    %96 = vector.broadcast %95 : vector<8x1xf32> to vector<8x16xf32>
    %97 = arith.subf %91, %96 : vector<8x16xf32>
    %98 = arith.mulf %97, %97 : vector<8x16xf32>
    %cst_50 = arith.constant dense<0.000000e+00> : vector<8xf32>
    %99 = vector.multi_reduction <add>, %98, %cst_50 [1] : vector<8x16xf32> to vector<8xf32>
    %100 = vector.shape_cast %99 : vector<8xf32> to vector<8x1xf32>
    %cst_51 = arith.constant 1.600000e+01 : f32
    %101 = vector.broadcast %cst_51 : f32 to vector<8x1xf32>
    %102 = arith.divf %100, %101 : vector<8x1xf32>
    %103 = vector.broadcast %95 : vector<8x1xf32> to vector<8x16xf32>
    %104 = arith.subf %91, %103 : vector<8x16xf32>
    %cst_52 = arith.constant 9.99999974E-6 : f32
    %105 = vector.broadcast %cst_52 : f32 to vector<8x1xf32>
    %106 = arith.addf %102, %105 : vector<8x1xf32>
    %107 = math.rsqrt %106 : vector<8x1xf32>
    %108 = vector.broadcast %107 : vector<8x1xf32> to vector<8x16xf32>
    %109 = arith.mulf %104, %108 : vector<8x16xf32>
    %110 = vector.broadcast %24 : vector<1x16xf32> to vector<8x16xf32>
    %111 = arith.mulf %109, %110 : vector<8x16xf32>
    %112 = vector.broadcast %26 : vector<1x16xf32> to vector<8x16xf32>
    %113 = arith.addf %111, %112 : vector<8x16xf32>
    %114 = arith.negf %67 : vector<8x16xf32>
    %115 = math.exp %114 : vector<8x16xf32>
    %cst_53 = arith.constant 1.000000e+00 : f32
    %116 = vector.broadcast %cst_53 : f32 to vector<8x16xf32>
    %117 = arith.addf %116, %115 : vector<8x16xf32>
    %118 = arith.divf %116, %117 : vector<8x16xf32>
    %119 = arith.mulf %67, %118 : vector<8x16xf32>
    %120 = arith.mulf %113, %119 : vector<8x16xf32>
    %cst_54 = arith.constant dense<0.000000e+00> : vector<8x32xf32>
    %121 = tpu.matmul %120, %28, %cst_54 {dimension_numbers = #tpu.dot_dimension_numbers<[1], [0], [0], [1], [0, 0, 1, 1], [], []>, precision = #tpu.contract_precision<fp32>} : vector<8x16xf32>, vector<16x32xf32>, vector<8x32xf32> -> vector<8x32xf32>
    %c0_55 = arith.constant 0 : index
    %122 = arith.index_cast %61 : i32 to index
    %c0_56 = arith.constant 0 : index
    %123 = vector.load %arg11[%c0_55, %122, %c0_56] : memref<1x16x32xf32, #tpu.memory_space<vmem>>, vector<1x8x32xf32>
    %124 = vector.shape_cast %123 : vector<1x8x32xf32> to vector<8x32xf32>
    %125 = arith.addf %124, %121 : vector<8x32xf32>
    %c0_57 = arith.constant 0 : index
    %126 = arith.index_cast %61 : i32 to index
    %c0_58 = arith.constant 0 : index
    %127 = vector.load %arg11[%c0_57, %126, %c0_58] : memref<1x16x32xf32, #tpu.memory_space<vmem>>, vector<1x8x32xf32>
    %128 = vector.shape_cast %127 : vector<1x8x32xf32> to vector<8x32xf32>
    %129 = vector.shape_cast %125 : vector<8x32xf32> to vector<1x8x32xf32>
    tpu.vector_store %arg11[%c0_57, %126, %c0_58], %129 {strides = array<i32>} : memref<1x16x32xf32, #tpu.memory_space<vmem>>, vector<1x8x32xf32>,
    %c1_i32_59 = arith.constant 1 : i32
    %c8_i32_60 = arith.constant 8 : i32
    %130 = arith.muli %c1_i32_59, %c8_i32_60 : i32
    %131 = tpu.assume_multiple %130, 8 : i32
    %132 = arith.index_cast %131 : i32 to index
    %c0_61 = arith.constant 0 : index
    %133 = vector.load %arg13[%132, %c0_61] : memref<16x64xf32, #tpu.memory_space<vmem>>, vector<8x64xf32>
    %134 = vector.extract_strided_slice %133 {offsets = [0, 0], sizes = [8, 16], strides = [1, 1]} : vector<8x64xf32> to vector<8x16xf32>
    %135 = vector.extract_strided_slice %133 {offsets = [0, 16], sizes = [8, 16], strides = [1, 1]} : vector<8x64xf32> to vector<8x16xf32>
    %136 = vector.extract_strided_slice %133 {offsets = [0, 32], sizes = [8, 16], strides = [1, 1]} : vector<8x64xf32> to vector<8x16xf32>
    %137 = vector.extract_strided_slice %133 {offsets = [0, 48], sizes = [8, 16], strides = [1, 1]} : vector<8x64xf32> to vector<8x16xf32>
    %138 = arith.mulf %134, %33 : vector<8x16xf32>
    %139 = arith.mulf %135, %40 : vector<8x16xf32>
    %cst_62 = arith.constant dense<0.000000e+00> : vector<8x8xf32>
    %140 = tpu.matmul %138, %139, %cst_62 {dimension_numbers = #tpu.dot_dimension_numbers<[1], [1], [0], [0], [0, 0, 1, 0], [], []>, precision = #tpu.contract_precision<fp32>} : vector<8x16xf32>, vector<8x16xf32>, vector<8x8xf32> -> vector<8x8xf32>
    %141 = vector.broadcast %22 : vector<1x16xf32> to vector<8x16xf32>
    %142 = arith.mulf %134, %141 : vector<8x16xf32>
    %143 = arith.mulf %142, %135 : vector<8x16xf32>
    %cst_63 = arith.constant dense<0.000000e+00> : vector<8xf32>
    %144 = vector.multi_reduction <add>, %143, %cst_63 [1] : vector<8x16xf32> to vector<8xf32>
    %145 = vector.shape_cast %144 : vector<8xf32> to vector<8x1xf32>
    %146 = arith.cmpi slt, %57, %56 : vector<8x8xi32>
    %147 = arith.cmpi eq, %57, %56 : vector<8x8xi32>
    %cst_64 = arith.constant 0.000000e+00 : f32
    %148 = vector.shape_cast %145 : vector<8x1xf32> to vector<8x1xf32>
    %149 = vector.broadcast %148 : vector<8x1xf32> to vector<8x8xf32>
    %150 = vector.broadcast %cst_64 : f32 to vector<8x8xf32>
    %151 = arith.select %147, %149, %150 : vector<8x8xi1>, vector<8x8xf32>
    %152 = arith.select %146, %140, %151 : vector<8x8xi1>, vector<8x8xf32>
    %cst_65 = arith.constant dense<0.000000e+00> : vector<8x16xf32>
    %153 = tpu.matmul %152, %136, %cst_65 {dimension_numbers = #tpu.dot_dimension_numbers<[1], [0], [0], [1], [0, 0, 1, 1], [], []>, precision = #tpu.contract_precision<fp32>} : vector<8x8xf32>, vector<8x16xf32>, vector<8x16xf32> -> vector<8x16xf32>
    %cst_66 = arith.constant dense<0.000000e+00> : vector<8x16xf32>
    %154 = tpu.matmul %138, %89, %cst_66 {dimension_numbers = #tpu.dot_dimension_numbers<[1], [0], [0], [1], [0, 0, 1, 1], [], []>, precision = #tpu.contract_precision<fp32>} : vector<8x16xf32>, vector<16x16xf32>, vector<8x16xf32> -> vector<8x16xf32>
    %155 = arith.addf %153, %154 : vector<8x16xf32>
    %cst_67 = arith.constant dense<0.000000e+00> : vector<16x16xf32>
    %156 = tpu.matmul %55, %89, %cst_67 {dimension_numbers = #tpu.dot_dimension_numbers<[1], [0], [0], [1], [0, 0, 1, 1], [], []>, precision = #tpu.contract_precision<fp32>} : vector<16x16xf32>, vector<16x16xf32>, vector<16x16xf32> -> vector<16x16xf32>
    %157 = arith.mulf %135, %45 : vector<8x16xf32>
    %cst_68 = arith.constant dense<0.000000e+00> : vector<16x16xf32>
    %158 = tpu.matmul %157, %136, %cst_68 {dimension_numbers = #tpu.dot_dimension_numbers<[0], [0], [1], [1], [0, 1, 1, 1], [], []>, precision = #tpu.contract_precision<fp32>} : vector<8x16xf32>, vector<8x16xf32>, vector<16x16xf32> -> vector<16x16xf32>
    %159 = arith.addf %156, %158 : vector<16x16xf32>
    %cst_69 = arith.constant 1.250000e-01 : f32
    %160 = vector.broadcast %cst_69 : f32 to vector<8x16xf32>
    %161 = arith.mulf %155, %160 : vector<8x16xf32>
    %cst_70 = arith.constant dense<0.000000e+00> : vector<8xf32>
    %162 = vector.multi_reduction <add>, %161, %cst_70 [1] : vector<8x16xf32> to vector<8xf32>
    %163 = vector.shape_cast %162 : vector<8xf32> to vector<8x1xf32>
    %cst_71 = arith.constant 1.600000e+01 : f32
    %164 = vector.broadcast %cst_71 : f32 to vector<8x1xf32>
    %165 = arith.divf %163, %164 : vector<8x1xf32>
    %166 = vector.broadcast %165 : vector<8x1xf32> to vector<8x16xf32>
    %167 = arith.subf %161, %166 : vector<8x16xf32>
    %168 = arith.mulf %167, %167 : vector<8x16xf32>
    %cst_72 = arith.constant dense<0.000000e+00> : vector<8xf32>
    %169 = vector.multi_reduction <add>, %168, %cst_72 [1] : vector<8x16xf32> to vector<8xf32>
    %170 = vector.shape_cast %169 : vector<8xf32> to vector<8x1xf32>
    %cst_73 = arith.constant 1.600000e+01 : f32
    %171 = vector.broadcast %cst_73 : f32 to vector<8x1xf32>
    %172 = arith.divf %170, %171 : vector<8x1xf32>
    %173 = vector.broadcast %165 : vector<8x1xf32> to vector<8x16xf32>
    %174 = arith.subf %161, %173 : vector<8x16xf32>
    %cst_74 = arith.constant 9.99999974E-6 : f32
    %175 = vector.broadcast %cst_74 : f32 to vector<8x1xf32>
    %176 = arith.addf %172, %175 : vector<8x1xf32>
    %177 = math.rsqrt %176 : vector<8x1xf32>
    %178 = vector.broadcast %177 : vector<8x1xf32> to vector<8x16xf32>
    %179 = arith.mulf %174, %178 : vector<8x16xf32>
    %180 = vector.broadcast %24 : vector<1x16xf32> to vector<8x16xf32>
    %181 = arith.mulf %179, %180 : vector<8x16xf32>
    %182 = vector.broadcast %26 : vector<1x16xf32> to vector<8x16xf32>
    %183 = arith.addf %181, %182 : vector<8x16xf32>
    %184 = arith.negf %137 : vector<8x16xf32>
    %185 = math.exp %184 : vector<8x16xf32>
    %cst_75 = arith.constant 1.000000e+00 : f32
    %186 = vector.broadcast %cst_75 : f32 to vector<8x16xf32>
    %187 = arith.addf %186, %185 : vector<8x16xf32>
    %188 = arith.divf %186, %187 : vector<8x16xf32>
    %189 = arith.mulf %137, %188 : vector<8x16xf32>
    %190 = arith.mulf %183, %189 : vector<8x16xf32>
    %cst_76 = arith.constant dense<0.000000e+00> : vector<8x32xf32>
    %191 = tpu.matmul %190, %28, %cst_76 {dimension_numbers = #tpu.dot_dimension_numbers<[1], [0], [0], [1], [0, 0, 1, 1], [], []>, precision = #tpu.contract_precision<fp32>} : vector<8x16xf32>, vector<16x32xf32>, vector<8x32xf32> -> vector<8x32xf32>
    %c0_77 = arith.constant 0 : index
    %192 = arith.index_cast %131 : i32 to index
    %c0_78 = arith.constant 0 : index
    %193 = vector.load %arg11[%c0_77, %192, %c0_78] : memref<1x16x32xf32, #tpu.memory_space<vmem>>, vector<1x8x32xf32>
    %194 = vector.shape_cast %193 : vector<1x8x32xf32> to vector<8x32xf32>
    %195 = arith.addf %194, %191 : vector<8x32xf32>
    %c0_79 = arith.constant 0 : index
    %196 = arith.index_cast %131 : i32 to index
    %c0_80 = arith.constant 0 : index
    %197 = vector.load %arg11[%c0_79, %196, %c0_80] : memref<1x16x32xf32, #tpu.memory_space<vmem>>, vector<1x8x32xf32>
    %198 = vector.shape_cast %197 : vector<1x8x32xf32> to vector<8x32xf32>
    %199 = vector.shape_cast %195 : vector<8x32xf32> to vector<1x8x32xf32>
    tpu.vector_store %arg11[%c0_79, %196, %c0_80], %199 {strides = array<i32>} : memref<1x16x32xf32, #tpu.memory_space<vmem>>, vector<1x8x32xf32>,
    %c2_i32 = arith.constant 2 : i32
    %c0_81 = arith.constant 0 : index
    %c0_82 = arith.constant 0 : index
    %c0_83 = arith.constant 0 : index
    %c0_84 = arith.constant 0 : index
    %200 = vector.load %arg12[%c0_81, %c0_82, %c0_83, %c0_84] : memref<1x1x16x16xf32, #tpu.memory_space<vmem>>, vector<1x1x16x16xf32>
    %201 = vector.shape_cast %200 : vector<1x1x16x16xf32> to vector<16x16xf32>
    %202 = vector.shape_cast %159 : vector<16x16xf32> to vector<1x1x16x16xf32>
    tpu.vector_store %arg12[%c0_81, %c0_82, %c0_83, %c0_84], %202 {strides = array<i32>} : memref<1x1x16x16xf32, #tpu.memory_space<vmem>>, vector<1x1x16x16xf32>,
    return
  }
  func.func @transform_0(%arg0: i32, %arg1: i32) -> (i32, i32, i32) {
    %c0_i32 = arith.constant 0 : i32
    %c0_i32_0 = arith.constant 0 : i32
    %c0_i32_1 = arith.constant 0 : i32
    return %arg0, %c0_i32, %c0_i32_0 : i32, i32, i32
  }
  func.func @transform_1(%arg0: i32, %arg1: i32) -> (i32, i32, i32) {
    %c0_i32 = arith.constant 0 : i32
    %c0_i32_0 = arith.constant 0 : i32
    %c0_i32_1 = arith.constant 0 : i32
    return %arg1, %c0_i32, %c0_i32_0 : i32, i32, i32
  }
  func.func @transform_2(%arg0: i32, %arg1: i32) -> (i32, i32, i32) {
    %c0_i32 = arith.constant 0 : i32
    %c0_i32_0 = arith.constant 0 : i32
    %c0_i32_1 = arith.constant 0 : i32
    return %arg1, %c0_i32, %c0_i32_0 : i32, i32, i32
  }
  func.func @transform_3(%arg0: i32, %arg1: i32) -> (i32, i32, i32) {
    %c0_i32 = arith.constant 0 : i32
    %c0_i32_0 = arith.constant 0 : i32
    %c0_i32_1 = arith.constant 0 : i32
    return %arg1, %c0_i32, %c0_i32_0 : i32, i32, i32
  }
  func.func @transform_4(%arg0: i32, %arg1: i32) -> (i32, i32, i32) {
    %c0_i32 = arith.constant 0 : i32
    %c0_i32_0 = arith.constant 0 : i32
    %c0_i32_1 = arith.constant 0 : i32
    return %arg1, %c0_i32, %c0_i32_0 : i32, i32, i32
  }
  func.func @transform_5(%arg0: i32, %arg1: i32) -> (i32, i32, i32, i32) {
    %c0_i32 = arith.constant 0 : i32
    %c0_i32_0 = arith.constant 0 : i32
    %c0_i32_1 = arith.constant 0 : i32
    return %arg0, %arg1, %c0_i32, %c0_i32_0 : i32, i32, i32, i32
  }
  func.func @transform_6(%arg0: i32, %arg1: i32) -> (i32, i32, i32) {
    %c0_i32 = arith.constant 0 : i32
    %c0_i32_0 = arith.constant 0 : i32
    %c0_i32_1 = arith.constant 0 : i32
    return %arg1, %c0_i32, %c0_i32_0 : i32, i32, i32
  }
  func.func @transform_7(%arg0: i32, %arg1: i32) -> (i32, i32, i32) {
    %c0_i32 = arith.constant 0 : i32
    %c0_i32_0 = arith.constant 0 : i32
    %c0_i32_1 = arith.constant 0 : i32
    return %arg1, %c0_i32, %c0_i32_0 : i32, i32, i32
  }
  func.func @transform_8(%arg0: i32, %arg1: i32) -> (i32, i32, i32) {
    %c0_i32 = arith.constant 0 : i32
    %c0_i32_0 = arith.constant 0 : i32
    %c0_i32_1 = arith.constant 0 : i32
    return %arg1, %c0_i32, %c0_i32_0 : i32, i32, i32
  }
  func.func @transform_9(%arg0: i32, %arg1: i32) -> (i32, i32, i32) {
    %c0_i32 = arith.constant 0 : i32
    %c0_i32_0 = arith.constant 0 : i32
    %c0_i32_1 = arith.constant 0 : i32
    return %arg0, %c0_i32, %c0_i32_0 : i32, i32, i32
  }
  func.func @transform_10(%arg0: i32, %arg1: i32) -> (i32, i32, i32, i32) {
    %c0_i32 = arith.constant 0 : i32
    %c0_i32_0 = arith.constant 0 : i32
    %c0_i32_1 = arith.constant 0 : i32
    return %arg0, %arg1, %c0_i32, %c0_i32_0 : i32, i32, i32, i32
  }
}

</mosaic_0001>

<bundles_post_ra>
// kernel: tpu_custom_call.1
= control target key start
LH: loop header
LB: loop body
LE: loop exit
PB: predicated region body
PF: predicated region fallthrough
CT: control target
= control target key end

     0   :  { %s10955_s0 = inlined_call_operand.hbm [shape: f32[2,16,32], index: 0, kind: input, shape index: {}]   ;;  %s10956_s1 = inlined_call_operand.hbm [shape: f32[2,32,64], index: 1, kind: input, shape index: {}]   ;;  %s10957_s2 = inlined_call_operand.hbm [shape: f32[2,32,64], index: 2, kind: input, shape index: {}]   ;;  %s10958_s3 = inlined_call_operand.vmem [shape: f32[2,1,16], index: 3, kind: input, shape index: {}]   ;;  %s10959_s4 = inlined_call_operand.vmem [shape: f32[2,1,16], index: 4, kind: input, shape index: {}]   ;;  %s10960_s5 = inlined_call_operand.hbm [shape: f32[2,2,16,16], index: 5, kind: input, shape index: {}]   ;;  %s10961_s6 = inlined_call_operand.vmem [shape: f32[2,1,16], index: 6, kind: input, shape index: {}]   ;;  %s10962_s7 = inlined_call_operand.vmem [shape: f32[2,1,16], index: 7, kind: input, shape index: {}]   ;;  %s10963_s8 = inlined_call_operand.hbm [shape: f32[2,16,32], index: 8, kind: input, shape index: {}]   ;;  %s10964_s9 = inlined_call_operand.hbm [shape: f32[2,16,32], index: 9, kind: output, shape index: {0}]   ;;  %s10965_s10 = inlined_call_operand.hbm [shape: f32[2,2,16,16], index: 10, kind: output, shape index: {1}]  }
   0x1   :  { %11014 = sst [smem:[#allocation41_spill]] %s10955_s0 }
   0x2   :  { %11015 = sst [smem:[#allocation42_spill]] %s10956_s1 }
   0x3   :  { %11016 = sst [smem:[#allocation43_spill]] %s10957_s2 }
   0x4   :  { %11017 = sst [smem:[#allocation44_spill]] %s10958_s3 }
   0x5   :  { %11018 = sst [smem:[#allocation45_spill]] %s10959_s4 }
   0x6   :  { %11019 = sst [smem:[#allocation46_spill]] %s10960_s5 }
   0x7   :  { %11020 = sst [smem:[#allocation47_spill]] %s10961_s6 }
   0x8   :  { %11021 = sst [smem:[#allocation48_spill]] %s10962_s7 }
   0x9   :  { %11022 = sst [smem:[#allocation49_spill]] %s10963_s8 }
   0xa   :  { %11023 = sst [smem:[#allocation50_spill]] %s10964_s9 }
   0xb   :  { %11024 = sst [smem:[#allocation51_spill]] %s10965_s10 }
   0xc   :  { %16 = vsyncpa [#allocation4], 0 }
   0xd   :  { %18 = vsyncpa [#allocation4 + $0x1], 0 }
   0xe   :  { %19 = vsyncpa [#allocation7], 0 }
   0xf   :  { %21 = vsyncpa [#allocation7 + $0x1], 0 }
  0x10   :  { %22 = vsyncpa [#allocation10], 0 }
  0x11   :  { %24 = vsyncpa [#allocation10 + $0x1], 0 }
  0x12   :  { %25 = vsyncpa [#allocation5], 0 }
  0x13   :  { %27 = vsyncpa [#allocation5 + $0x1], 0 }
  0x14   :  { %28 = vsyncpa [#allocation14], 0 }
  0x15   :  { %30 = vsyncpa [#allocation14 + $0x1], 0  ;;  %s9728_s13 = smov 0   ;;  %s9730_s14 = smov 0  }
  0x16   :  { %s9732_s15 = smov 0   ;;  %s9734_s16 = smov 0  }
  0x17   :  { %s9736_s17 = smov 0   ;;  %s9738_s18 = smov 0  }
  0x18   :  { %s9740_s19 = smov 0   ;;  %s9742_s20 = smov 0  }
  0x19   :  { %s9744_s21 = smov 0   ;;  %s9746_s22 = smov 0  }
  0x1a   :  { %s9748_s23 = smov 0   ;;  %s9750_s24 = smov 0  }
  0x1b   :  { %s9752_s25 = smov 0   ;;  %s9754_s26 = smov 0  }
  0x1c LB: > { %11025 = sst [smem:[#allocation21_spill]] %s9600_s13  ;;  %s45_s27 = sadd.s32 1, %s9644_s24  ;;  %s9652_s26 = sphi %s9754_s26, %s36_s26   ;;  %s9648_s25 = sphi %s9752_s25, %s11132_s25   ;;  %s9644_s24 = sphi %s9750_s24, %s11131_s24   ;;  %s9640_s23 = sphi %s9748_s23, %s11136_s23   ;;  %s9636_s22 = sphi %s9746_s22, %s11129_s22   ;;  %s9632_s21 = sphi %s9744_s21, %s11135_s21   ;;  %s9628_s20 = sphi %s9742_s20, %s11134_s20   ;;  %s9624_s19 = sphi %s9740_s19, %s11133_s19   ;;  %s9620_s18 = sphi %s9738_s18, %s11127_s18   ;;  %s9616_s17 = sphi %s9736_s17, %s11126_s17   ;;  %s9612_s16 = sphi %s9734_s16, %s11125_s16   ;;  %s9608_s15 = sphi %s9732_s15, %s11124_s15   ;;  %s9604_s14 = sphi %s9730_s14, %s11123_s14   ;;  %s9600_s13 = sphi %s9728_s13, %s11122_s13  }
  0x1d   : > { %11026 = sst [smem:[#allocation22_spill]] %s9604_s14  ;;  %p10975_p0 = scmp.eq.s32.totalorder %s9652_s26, 0 }
  0x1e   : > { %11027 = sst [smem:[#allocation23_spill]] %s9608_s15  ;;  %p9800_p1 = scmp.ge.s32.totalorder %s45_s27, 2 }
  0x1f   : > { %11028 = sst [smem:[#allocation24_spill]] %s9616_s17  ;;  %s81_s29 = sadd.s32 1, %s9620_s18 }
  0x20   : > { %11029 = sst [smem:[#allocation25_spill]] %s9620_s18  ;;  %p88_p2 = scmp.ne.s32.totalorder %s9620_s18, %s9616_s17 }
  0x21   : > { %11030 = sst [smem:[#allocation26_spill]] %s9636_s22  ;;  %s11138_s27 = smov (%p9800_p1, %s45_s27), 0 }
  0x22   : > { %11031 = sst [smem:[#allocation27_spill]] %s9640_s23  ;;  %p90_p4 = por %p88_p2, %p10975_p0 }
  0x23   : > { %11032 = sst [smem:[#allocation28_spill]] %s9644_s24  ;;  %s9817_s30 = ssub.s32 %s9644_s24, %s11138_s27 }
  0x24   : > { %11033 = sst [smem:[#allocation29_spill]] %s9648_s25  ;;  %p10974_p5 = scmp.lt.s32.totalorder %s9652_s26, 4 }
  0x25   : > { %s11034_s28 = scalar_select %p9800_p1, 1, 0 }
  0x26   : > { %11035 = sst [smem:[#allocation30_spill]] %s11138_s27  ;;  %p79_p6 = scmp.eq.s32.totalorder %s9817_s30, 0 }
  0x27   : > { %s10970_s9 = sand.u32 1, %s9620_s18   ;;  %s7939_s23 = sshll.u32 %s9644_s24, 9 }
  0x28   : > { %s9823_s12 = scalar_select %p79_p6, %s9620_s18, %s81_s29  }
  0x29   : > { %s9828_s10 = sshll.u32 %s10970_s9, 5  ;;  %s11037_s1 = sld [smem:[#allocation42_spill]] }
  0x2a   : > { %11036 = sst [smem:[#allocation31_spill]] %s9823_s12  ;;  %s381_s27 = scalar_lea.vmem [#allocation6], %s9828_s10 }
  0x2b   : > { %s388_s3 = sshll.u32 %s381_s27, 4  ;;  %p9839_p7 = pnand %p10974_p5, %p90_p4  ;;  %s9843_s3 = int_to_ptr.vmem [resolvable:$true] %s388_s3 }
  0x2c   : > { %s11039_s2 = sld [smem:[#allocation43_spill]]  ;;  %s11040_s7 = sand.u32 1, %s9652_s26  }
  0x2d   : > { %s11038_s29 = scalar_select %p9839_p7, 1, 0 }
  0x2e   : > { %s9852_s12 = scalar_lea.sflag [#allocation7], %s11040_s7  ;;  %p9858_p9 = pneg %p9839_p7 }
  0x2f   : > { %s9834_s4 = scalar_lea.hbm %s11037_s1, %s7939_s23  ;;  %11041 = sst [smem:[#allocation32_spill]] %s9852_s12 }
  0x30   : > { %s9312_s22 = scalar_lea.hbm %s9834_s4, 512  ;;  %s9317_s9 = scalar_lea.hbm %s11037_s1, 1024 }
  0x31   : > { %p9313_p8 = scmp.ne.s32.totalorder %s9834_s4, %s9312_s22  ;;  %p9318_p12 = scmp.lt.u32.totalorder %s9834_s4, %s11037_s1 }
  0x32   : > { %s9848_s6 = scalar_lea.hbm %s11039_s2, %s7939_s23  ;;  %p9319_p13 = scmp.lt.u32.totalorder %s9317_s9, %s9312_s22 }
  0x33   : > { %s11042_s27 = scalar_select %p9858_p9, 1, 0 }
  0x34   : > { %p9315_p10 = pnand %p9858_p9, %p9313_p8  ;;  %p9320_p2 = por %p9319_p13, %p9318_p12 }
  0x35   : > { %p9321_p4 = scmp.lt.u32.totalorder %s9312_s22, %s9834_s4 }
  0x36   : > { %p9316_p11 = pneg %p9315_p10 }
  0x37   : > { %p9322_p6 = por %p9321_p4, %p9320_p2 }
  0x39   : > { %p9323_p5 = pnand %p9322_p6, %p9316_p11 }
  0x3b   : > { %9326 = shalt.err (!%p9323_p5)
}
  0x3c   : > { %s9327_s7 = scalar_lea.vmem %s9843_s3, 512  ;;  %s9654_s0 = smov [#allocation6]  }
  0x3d   : > { %p9328_p8 = scmp.ne.s32.totalorder %s9843_s3, %s9327_s7  ;;  %s9332_s8 = sshll.u32 %s9654_s0, 4  ;;  %s9333_s8 = int_to_ptr.vmem [resolvable:$false] %s9332_s8 }
  0x3e   : > { %s9334_s23 = scalar_lea.vmem %s9333_s8, 1024  ;;  %p9335_p3 = scmp.lt.s32.totalorder %s9843_s3, %s9333_s8 }
  0x3f   : > { %p9330_p10 = pnand %p9328_p8, %p9858_p9  ;;  %p9336_p1 = scmp.lt.s32.totalorder %s9334_s23, %s9327_s7 }
  0x41   : > { %p9331_p0 = pneg %p9330_p10  ;;  %p9337_p12 = por %p9336_p1, %p9335_p3 }
  0x43   : > { %p9338_p13 = pnand %p9337_p12, %p9331_p0 }
  0x45   : > { %9341 = shalt.err (!%p9338_p13)
}
  0x46   : > { %s10977_s22 = smov 128   ;;  %s10979_s9 = smov 8  }
  0x47   : > { %9149 = dma.hbm_to_vmem [thread:$0]  (!%p9839_p7), %s9834_s4, 512, %s9843_s3, %s9852_s12, %s10977_s22, %s10977_s22, %s10979_s9  }
  0x48   : > { %s402_s11 = scalar_lea.vmem [#allocation8], %s9828_s10  ;;  %s11043_s0 = sand.u32 1, %s9620_s18  }
  0x49   : > { %s409_s7 = sshll.u32 %s402_s11, 4  ;;  %s9888_s8 = sshll.u32 %s11043_s0, 4  ;;  %s9890_s7 = int_to_ptr.vmem [resolvable:$true] %s409_s7 }
  0x4a   : > { %11044 = sst [smem:[#allocation33_spill]] %s9888_s8  ;;  %p7913_p0 = scmp.ge.s32.totalorder %s9652_s26, 1 }
  0x4b   : > { %p485_p1 = scmp.lt.s32.totalorder %s9652_s26, 5  ;;  %s9899_s3 = sadd.s32 4294967295, %s9652_s26  }
  0x4c   : > { %s7894_s4 = sadd.s32 4294967294, %s9652_s26   ;;  %s48_s10 = sadd.s32 1, %s9648_s25 }
  0x4d   : > { %p9894_p3 = pnand %p7913_p0, %p485_p1  ;;  %p10995_p5 = scmp.eq.s32.totalorder %s9899_s3, 0 }
  0x4e   : > { %p11047_p11 = scmp.ne.s32.totalorder %s11034_s28, 0  ;;  %p11048_p2 = scmp.ne.s32.totalorder %s9616_s17, %s9612_s16 }
  0x4f   : > { %s11045_s23 = scalar_select %p9894_p3, 1, 0 }
  0x50   : > { %s11140_s10 = smov (!%p11047_p11, %s48_s10), %s9648_s25  ;;  %p9912_p4 = por %p11048_p2, %p10995_p5 }
  0x51   : > { %11046 = sst [smem:[#allocation34_spill]] %s11045_s23  ;;  %s187_s0 = sadd.s32 1, %s9608_s15 }
  0x52   : > { %s11049_s11 = scalar_select %p9912_p4, 1, 0 }
  0x53   : > { %p50_p6 = scmp.ge.s32.totalorder %s11140_s10, 2  ;;  %p194_p8 = scmp.ne.s32.totalorder %s9608_s15, %s9604_s14 }
  0x54   : > { %11050 = sst [smem:[#allocation35_spill]] %s11049_s11  ;;  %p200_p10 = scmp.ne.s32.totalorder %s9604_s14, %s9600_s13 }
  0x55   : > { %p10996_p12 = scmp.eq.s32.totalorder %s9899_s3, 3  ;;  %s11142_s10 = smov (%p50_p6, %s11140_s10), 0 }
  0x56   : > { %11051 = sst [smem:[#allocation36_spill]] %s11142_s10  ;;  %p11052_p13 = scmp.eq.s32.totalorder %s9652_s26, 0 }
  0x57   : > { %p9932_p1 = por %p200_p10, %p10995_p5  ;;  %s9938_s22 = ssub.s32 %s9648_s25, %s11142_s10 }
  0x58   : > { %p9926_p0 = por %p194_p8, %p11052_p13  ;;  %p9940_p11 = scmp.eq.s32.totalorder %s7894_s4, 3 }
  0x59   : > { %s11054_s16 = scalar_select %p9932_p1, 1, 0 }
  0x5a   : > { %s184_s1 = sor.u32 %s9817_s30, %s9938_s22  ;;  %p9948_p2 = por %p10996_p12, %p194_p8 }
  0x5b   : > { %11055 = sst [smem:[#allocation37_spill]] %s11054_s16  ;;  %p185_p6 = scmp.eq.s32.totalorder %s184_s1, 0 }
  0x5c   : > { %s11057_s18 = scalar_select %p9948_p2, 1, 0 }
  0x5d   : > { %p9954_p13 = por %p9940_p11, %p200_p10  ;;  %s433_s4 = sand.u32 1, %s9608_s15  }
  0x5e   : > { %11058 = sst [smem:[#allocation38_spill]] %s11057_s18  ;;  %s7906_s16 = sshll.u32 %s433_s4, 4 }
  0x5f   : > { %s11059_s10 = scalar_select %p9954_p13, 1, 0 }
  0x60   : > { %s9960_s13 = scalar_select %p185_p6, %s9608_s15, %s187_s0  }
  0x61   : > { %s7907_s14 = sshll.u32 %s9644_s24, 1  ;;  %s7908_s11 = sshll.u32 %s9648_s25, 2 }
  0x62   : > { %11060 = sst [smem:[#allocation39_spill]] %s9960_s13  ;;  %s441_s17 = sadd.s32 %s7908_s11, %s7907_s14 }
  0x63   : > { %s435_s30 = scalar_lea.vmem [#allocation9], %s7906_s16  ;;  %s7909_s8 = sshll.u32 %s441_s17, 7 }
  0x64   : > { %s444_s23 = sshll.u32 %s435_s30, 4  ;;  %s11061_s5 = sld [smem:[#allocation46_spill]]  ;;  %s9964_s23 = int_to_ptr.vmem [resolvable:$true] %s444_s23 }
  0x65   : > { %p11062_p8 = scmp.lt.s32.totalorder %s9652_s26, 4  ;;  %s11064_s14 = sand.u32 1, %s9652_s26  }
  0x66   : > { %s9981_s17 = scalar_lea.sflag [#allocation10], %s11064_s14 }
  0x67   : > { %p9975_p10 = pnand %p11062_p8, %p9926_p0 }
  0x69   : > { %p9344_p5 = pneg %p9975_p10 }
  0x6a   : > { %s9969_s1 = scalar_lea.hbm %s11061_s5, %s7909_s8  ;;  %s9347_s8 = scalar_lea.hbm %s11061_s5, 1024 }
  0x6b   : > { %s9342_s11 = scalar_lea.hbm %s9969_s1, 256  ;;  %p9348_p0 = scmp.lt.u32.totalorder %s9969_s1, %s11061_s5 }
  0x6c   : > { %p9343_p6 = scmp.ne.s32.totalorder %s9969_s1, %s9342_s11  ;;  %p9349_p8 = scmp.lt.u32.totalorder %s9347_s8, %s9342_s11 }
  0x6d   : > { %p9351_p1 = scmp.lt.u32.totalorder %s9342_s11, %s9969_s1 }
  0x6e   : > { %p9345_p12 = pnand %p9344_p5, %p9343_p6  ;;  %p9350_p2 = por %p9349_p8, %p9348_p0 }
  0x70   : > { %p9346_p13 = pneg %p9345_p12  ;;  %p9352_p4 = por %p9351_p1, %p9350_p2 }
  0x72   : > { %p9353_p3 = pnand %p9352_p4, %p9346_p13 }
  0x74   : > { %9356 = shalt.err (!%p9353_p3)
}
  0x75   : > { %s9357_s4 = scalar_lea.vmem %s9964_s23, 256  ;;  %s9657_s30 = smov [#allocation9]  }
  0x76   : > { %p9358_p12 = scmp.ne.s32.totalorder %s9964_s23, %s9357_s4  ;;  %s9362_s14 = sshll.u32 %s9657_s30, 4  ;;  %s9363_s14 = int_to_ptr.vmem [resolvable:$false] %s9362_s14 }
  0x77   : > { %s9364_s18 = scalar_lea.vmem %s9363_s14, 512  ;;  %p9365_p9 = scmp.lt.s32.totalorder %s9964_s23, %s9363_s14 }
  0x78   : > { %p9360_p6 = pnand %p9358_p12, %p9344_p5  ;;  %p9366_p0 = scmp.lt.s32.totalorder %s9364_s18, %s9357_s4 }
  0x7a   : > { %p9361_p7 = pneg %p9360_p6  ;;  %p9367_p8 = por %p9366_p0, %p9365_p9 }
  0x7c   : > { %p9368_p1 = pnand %p9367_p8, %p9361_p7 }
  0x7e   : > { %9371 = shalt.err (!%p9368_p1)
}
  0x7f   : > { %s11065_s11 = smov 8   ;;  %s11066_s12 = smov 128  }
  0x80   : > { %9155 = dma.hbm_to_vmem [thread:$0]  (!%p9975_p10), %s9969_s1, 256, %s9964_s23, %s9981_s17, %s11066_s12, %s11066_s12, %s11065_s11  }
  0x81   : > { %p53_p7 = scmp.eq.s32.totalorder %s9938_s22, 0  ;;  %s55_s0 = sadd.s32 1, %s9632_s21 }
  0x82   : > { %p62_p9 = scmp.ne.s32.totalorder %s9632_s21, %s9628_s20  ;;  %p11068_p3 = scmp.eq.s32.totalorder %s9652_s26, 0 }
  0x83   : > { %s10017_s8 = scalar_select %p53_p7, %s9632_s21, %s55_s0  }
  0x84   : > { %p64_p5 = por %p11068_p3, %p62_p9  ;;  %p68_p4 = scmp.ne.s32.totalorder %s9628_s20, %s9624_s19 }
  0x85   : > { %11067 = sst [smem:[#allocation40_spill]] %s10017_s8  ;;  %p11069_p2 = scmp.eq.s32.totalorder %s9899_s3, 3 }
  0x86   : > { %s11005_s16 = sand.u32 1, %s9632_s21   ;;  %p11071_p10 = scmp.eq.s32.totalorder %s9899_s3, 0 }
  0x87   : > { %p10025_p13 = por %p11069_p2, %p62_p9  ;;  %p10038_p6 = por %p9940_p11, %p68_p4 }
  0x88   : > { %p10032_p12 = por %p11071_p10, %p68_p4  ;;  %s7897_s1 = sshll.u32 %s11005_s16, 4 }
  0x89   : > { %s11070_s28 = scalar_select %p10025_p13, 1, 0 }
  0x8a   : > { %s11072_s22 = scalar_select %p10032_p12, 1, 0 }
  0x8b   : > { %s11073_s23 = scalar_select %p10038_p6, 1, 0 }
  0x8c   : > { %s7938_s4 = sshll.u32 %s9648_s25, 8  ;;  %s11074_s18 = sld [smem:[#allocation41_spill]] }
  0x8d   : > { %s360_s8 = scalar_lea.vmem [#allocation3], %s7897_s1  ;;  %p11076_p0 = scmp.lt.s32.totalorder %s9652_s26, 4 }
  0x8e   : > { %s367_s13 = sshll.u32 %s360_s8, 4  ;;  %s9372_s15 = scalar_lea.hbm %s9848_s6, 512  ;;  %s10050_s13 = int_to_ptr.vmem [resolvable:$true] %s367_s13 }
  0x8f   : > { %p10054_p8 = pnand %p11076_p0, %p64_p5  ;;  %p9373_p11 = scmp.ne.s32.totalorder %s9848_s6, %s9372_s15 }
  0x90   : > { %p11078_p1 = scmp.ne.s32.totalorder %s11042_s27, 0  ;;  %s9377_s30 = scalar_lea.hbm %s11039_s2, 1024 }
  0x91   : > { %p9378_p3 = scmp.lt.u32.totalorder %s9848_s6, %s11039_s2  ;;  %p9379_p4 = scmp.lt.u32.totalorder %s9377_s30, %s9372_s15 }
  0x92   : > { %s11075_s0 = smov %s11074_s18  ;;  %s10048_s5 = scalar_lea.hbm %s11074_s18, %s7938_s4 }
  0x93   : > { %p9375_p7 = pnand %p9373_p11, %p11078_p1  ;;  %p9380_p2 = por %p9379_p4, %p9378_p3 }
  0x94   : > { %p9381_p10 = scmp.lt.u32.totalorder %s9372_s15, %s9848_s6 }
  0x95   : > { %p9376_p9 = pneg %p9375_p7 }
  0x96   : > { %p9382_p5 = por %p9381_p10, %p9380_p2 }
  0x98   : > { %p9383_p0 = pnand %p9382_p5, %p9376_p9 }
  0x9a   : > { %9386 = shalt.err (!%p9383_p0)
}
  0x9b   : > { %s9387_s8 = scalar_lea.vmem %s9890_s7, 512  ;;  %s9658_s25 = smov [#allocation8]  }
  0x9c   : > { %p9388_p11 = scmp.ne.s32.totalorder %s9890_s7, %s9387_s8  ;;  %s9392_s16 = sshll.u32 %s9658_s25, 4  ;;  %s9393_s16 = int_to_ptr.vmem [resolvable:$false] %s9392_s16 }
  0x9d   : > { %s9394_s1 = scalar_lea.vmem %s9393_s16, 1024  ;;  %p9395_p13 = scmp.lt.s32.totalorder %s9890_s7, %s9393_s16 }
  0x9e   : > { %p9390_p7 = pnand %p9388_p11, %p11078_p1  ;;  %p9396_p12 = scmp.lt.s32.totalorder %s9394_s1, %s9387_s8 }
  0xa0   : > { %p9391_p6 = pneg %p9390_p7  ;;  %p9397_p3 = por %p9396_p12, %p9395_p13 }
  0xa2   : > { %p9398_p4 = pnand %p9397_p3, %p9391_p6 }
  0xa4   : > { %9401 = shalt.err (!%p9398_p4)
}
  0xa5   : > { %p11079_p9 = scmp.ne.s32.totalorder %s11038_s29, 0  ;;  %s11080_s15 = sld [smem:[#allocation32_spill]] }
  0xa6   : > { %s11081_s18 = sand.u32 1, %s9632_s21   ;;  %s9402_s4 = scalar_lea.hbm %s10048_s5, 256 }
  0xa7   : > { %s10085_s30 = scalar_lea.sflag [#allocation4], %s11081_s18  ;;  %p9403_p13 = scmp.ne.s32.totalorder %s10048_s5, %s9402_s4 }
  0xa8   : > { %p9404_p12 = pneg %p10054_p8  ;;  %s9407_s25 = scalar_lea.hbm %s11075_s0, 512 }
  0xa9   : > { %p9408_p10 = scmp.lt.u32.totalorder %s10048_s5, %s11075_s0  ;;  %p9409_p5 = scmp.lt.u32.totalorder %s9407_s25, %s9402_s4 }
  0xaa   : > { %p9405_p6 = pnand %p9404_p12, %p9403_p13  ;;  %p9411_p11 = scmp.lt.u32.totalorder %s9402_s4, %s10048_s5 }
  0xab   : > { %9152 = dma.hbm_to_vmem [thread:$0]  (!%p11079_p9), %s9848_s6, 512, %s9890_s7, %s11080_s15, %s11066_s12, %s11066_s12, %s11065_s11  }
  0xac   : > { %p9406_p2 = pneg %p9405_p6  ;;  %p9410_p0 = por %p9409_p5, %p9408_p10 }
  0xae   : > { %p9412_p7 = por %p9411_p11, %p9410_p0 }
  0xb0   : > { %p9413_p3 = pnand %p9412_p7, %p9406_p2 }
  0xb2   : > { %9416 = shalt.err (!%p9413_p3)
}
  0xb3   : > { %s9417_s6 = scalar_lea.vmem %s10050_s13, 256  ;;  %s9659_s7 = smov [#allocation3]  }
  0xb4   : > { %p9418_p4 = scmp.ne.s32.totalorder %s10050_s13, %s9417_s6  ;;  %s9422_s15 = sshll.u32 %s9659_s7, 4  ;;  %s9423_s15 = int_to_ptr.vmem [resolvable:$false] %s9422_s15 }
  0xb5   : > { %s9424_s18 = scalar_lea.vmem %s9423_s15, 512  ;;  %p9425_p9 = scmp.lt.s32.totalorder %s10050_s13, %s9423_s15 }
  0xb6   : > { %p9420_p13 = pnand %p9418_p4, %p9404_p12  ;;  %p9426_p10 = scmp.lt.s32.totalorder %s9424_s18, %s9417_s6 }
  0xb8   : > { %p9421_p6 = pneg %p9420_p13  ;;  %p9427_p5 = por %p9426_p10, %p9425_p9 }
  0xba   : > { %p9428_p0 = pnand %p9427_p5, %p9421_p6 }
  0xbc   : > { %9431 = shalt.err (!%p9428_p0)
}
  0xbd   : > { %s11082_s4 = sld [smem:[#allocation33_spill]]  ;;  %s7941_s14 = sshll.u32 %s9644_s24, 8 }
  0xbe   : > { %9146 = dma.hbm_to_vmem [thread:$0]  (!%p10054_p8), %s10048_s5, 256, %s10050_s13, %s10085_s30, %s11066_s12, %s11066_s12, %s11065_s11  }
  0xbf   : > { %s11083_s6 = sld [smem:[#allocation49_spill]] }
  0xc3   : > { %s470_s8 = scalar_lea.vmem [#allocation11], %s11082_s4 }
  0xc4   : > { %s477_s25 = sshll.u32 %s470_s8, 4  ;;  %s10123_s25 = int_to_ptr.vmem [resolvable:$true] %s477_s25 }
  0xc5   : > { %s10121_s7 = scalar_lea.hbm %s11083_s6, %s7941_s14  ;;  %s9437_s30 = scalar_lea.hbm %s11083_s6, 512 }
  0xc6   : > { %s9432_s9 = scalar_lea.hbm %s10121_s7, 256  ;;  %p9438_p8 = scmp.lt.u32.totalorder %s10121_s7, %s11083_s6 }
  0xc7   : > { %p9433_p9 = scmp.ne.s32.totalorder %s10121_s7, %s9432_s9  ;;  %p9439_p11 = scmp.lt.u32.totalorder %s9437_s30, %s9432_s9 }
  0xc8   : > { %p9441_p3 = scmp.lt.u32.totalorder %s9432_s9, %s10121_s7 }
  0xc9   : > { %p9435_p12 = pnand %p9433_p9, %p11078_p1  ;;  %p9440_p7 = por %p9439_p11, %p9438_p8 }
  0xcb   : > { %p9436_p2 = pneg %p9435_p12  ;;  %p9442_p4 = por %p9441_p3, %p9440_p7 }
  0xcd   : > { %p9443_p13 = pnand %p9442_p4, %p9436_p2 }
  0xcf   : > { %9446 = shalt.err (!%p9443_p13)
}
  0xd0   : > { %s9447_s4 = scalar_lea.vmem %s10123_s25, 256  ;;  %s9660_s14 = smov [#allocation11]  }
  0xd1   : > { %p9448_p6 = scmp.ne.s32.totalorder %s10123_s25, %s9447_s4  ;;  %s9452_s8 = sshll.u32 %s9660_s14, 4  ;;  %s9453_s8 = int_to_ptr.vmem [resolvable:$false] %s9452_s8 }
  0xd2   : > { %s9454_s16 = scalar_lea.vmem %s9453_s8, 512  ;;  %p9455_p0 = scmp.lt.s32.totalorder %s10123_s25, %s9453_s8 }
  0xd3   : > { %p9450_p10 = pnand %p9448_p6, %p11078_p1  ;;  %p9456_p9 = scmp.lt.s32.totalorder %s9454_s16, %s9447_s4 }
  0xd5   : > { %p9451_p5 = pneg %p9450_p10  ;;  %p9457_p12 = por %p9456_p9, %p9455_p0 }
  0xd7   : > { %p9458_p8 = pnand %p9457_p12, %p9451_p5 }
  0xd9   : > { %9461 = shalt.err (!%p9458_p8)
}
  0xda   : > { %p11084_p2 = scmp.ne.s32.totalorder %s11038_s29, 0  ;;  %s11085_s27 = sld [smem:[#allocation34_spill]] }
  0xdc   : > { %9158 = dma.hbm_to_vmem [thread:$0]  (!%p11084_p2), %s10121_s7, 256, %s10123_s25, %s9981_s17, %s11066_s12, %s11066_s12, %s11065_s11  }
  0xe0   : > { %p11086_p1 = scmp.ne.s32.totalorder %s11085_s27, 0 }
  0xe1   : > { %s10153_s1 = sand.u32 (!%p11086_p1), 1, %s9628_s20   ;;  %p11087_p11 = scmp.ne.s32.totalorder (!%p11086_p1), %s11072_s22, 0 }
  0xe2   : > { %489 = sbr.rel (%p11086_p1) target bundleno = 2802 (0xaf2), region = 56  ;;  %s11010_s9 = sshll.u32 (!%p11086_p1), %s10153_s1, 4 }
  0xe3   : > { %s492_s5 = scalar_lea.sflag (!%p11086_p1), [#allocation4], %s10153_s1  ;;  %s10159_s29 = scalar_lea.vmem (!%p11086_p1), [#allocation3], %s11010_s9 }
  0xe9   : > { %9575 = dma.done.wait (%p11087_p11), %s492_s5, 256  }
  0xea   : > { %9577 = vsyncadd (%p11087_p11), %s492_s5, 4294967040  ;;  %s11088_s17 = sld [smem:[#allocation24_spill]]  ;;  %s11089_s11 = sld [smem:[#allocation35_spill]] }
  0xeb   : > { %s500_s12 = sand.u32 1, %s9899_s3  }
  0xec   : > { %s501_s13 = scalar_lea.sflag [#allocation7], %s500_s12 }
  0xf0   : > { %s502_s25 = sand.u32 1, %s11088_s17   ;;  %p11090_p7 = scmp.ne.s32.totalorder %s11089_s11, 0 }
  0xf1   : > { %s7915_s7 = sshll.u32 %s502_s25, 5 }
  0xf2   : > { %s10167_s30 = scalar_lea.vmem [#allocation6], %s7915_s7 }
  0xf3   : > { %9579 = dma.done.wait (%p11090_p7), %s501_s13, 1024  }
  0xf4   : > { %9581 = vsyncadd (%p11090_p7), %s501_s13, 4294966272  ;;  %s11091_s15 = sld [smem:[#allocation22_spill]]  ;;  %s11092_s18 = sld [smem:[#allocation37_spill]] }
  0xf5   : > { %s513_s14 = scalar_lea.vmem [#allocation8], %s7915_s7  ;;  %s519_s3 = scalar_lea.sflag [#allocation10], %s500_s12 }
  0xfa   : > { %s11009_s4 = sand.u32 1, %s11091_s15   ;;  %p11093_p3 = scmp.ne.s32.totalorder %s11092_s18, 0 }
  0xfb   : > { %s10176_s22 = sshll.u32 %s11009_s4, 4 }
  0xfc   : > { %9583 = dma.done.wait (%p11093_p3), %s519_s3, 256  }
  0xfd   : > { %9585 = vsyncadd (%p11093_p3), %s519_s3, 4294967040  ;;  %s10183_s16 = sshll.u32 %s502_s25, 4 }
  0xfe   : > { %9587 = dma.done.wait (%p11090_p7), %s519_s3, 256  }
  0xff   : > { %9589 = vsyncadd (%p11090_p7), %s519_s3, 4294967040  ;;  %s11094_s5 = sld [smem:[#allocation26_spill]]  ;;  %v621_v0 = vlaneseq  ;;  %s11095_s25 = sld [smem:[#allocation44_spill]]  ;;  %v635_v3 = vld [vmem:[%s513_s14] sm:$0xff]  ;;  %v636_v4 = vld [vmem:[%s513_s14 + $0x8] sm:$0xff]  ;;  %vm639_vm1 = vcmask 261120  }
 0x100   : > { %s11096_s18 = sld [smem:[#allocation45_spill]]  ;;  %s11097_s8 = sld [smem:[#allocation47_spill]]  ;;  %v637_v5 = vld [vmem:[%s513_s14 + $0x10] sm:$0xff]  ;;  %v647_v6 = vand.u32 4294901760, %v635_v3  ;;  %v650_v7 = vand.u32 4294901760, %v636_v4  ;;  %v638_v8 = vld [vmem:[%s513_s14 + $0x18] sm:$0xff] }
 0x101   : > { %v10192_v1 = vshrl.u32 %v621_v0, 7  ;;  %s11098_s6 = sld [smem:[#allocation48_spill]]  ;;  %v653_v9 = vand.u32 4294901760, %v637_v5  ;;  %v10218_v10 = vld [vmem:[%s10159_s29] sm:$0xff]  ;;  %v10221_v11 = vld [vmem:[%s10159_s29 + $0x8] sm:$0xff]  ;;  %v656_v12 = vand.u32 4294901760, %v638_v8 }
 0x102   : > { %v619_v13 = vrot.slane %v10218_v10, 7  ;;  %v620_v14 = vrot.slane %v10221_v11, 7  ;;  %v10226_v15 = vpack.c.bf16 %v650_v7, %v647_v6  ;;  %v737_v16 = vsub.f32 %v635_v3, %v647_v6  ;;  %v631_v54 = vld [vmem:[%s10167_s30] sm:$0xff]  ;;  %v632_v55 = vld [vmem:[%s10167_s30 + $0x8] sm:$0xff]  ;;  %v633_v60 = vld [vmem:[%s10167_s30 + $0x10] sm:$0xff]  ;;  %s11099_s2 = sshll.u32 %s10153_s1, 4 }
 0x103   : > { %v10198_v2 = vadd.s32 8, %v10192_v1  ;;  %vm623_vm0 = vcmp.lt.s32.totalorder %v10192_v1, 1  ;;  %vm627_vm2 = vcmp.eq.s32.totalorder %v10192_v1, 0  ;;  %v744_v17 = vsub.f32 %v636_v4, %v650_v7  ;;  %v634_v61 = vld [vmem:[%s10167_s30 + $0x18] sm:$0xff]  ;;  %s10292_s0 = scalar_lea.vmem [#allocation12], %s11099_s2 }
 0x104   : > { %v10228_v18 = vsub.f32 %v637_v5, %v653_v9  ;;  %v10230_v19 = vpack.c.bf16 %v656_v12, %v653_v9  ;;  %v625_v20 = vsel %vm623_vm0, %v620_v14, %v619_v13  ;;  %v624_v21 = vsel %vm623_vm0, %v619_v13, %v620_v14  ;;  %8784 = vmatprep.subr.bf16.mxu0 %v10226_v15 }
 0x105   : > { %p605_p4 = scmp.lt.s32.totalorder %s11094_s5, 1  ;;  %v758_v22 = vsub.f32 %v638_v8, %v656_v12  ;;  %v629_v23 = vsel %vm627_vm2, 0.0, %v625_v20  ;;  %v738_v24 = vand.u32 4294901760, %v737_v16  ;;  %v745_v25 = vand.u32 4294901760, %v744_v17  ;;  %8786 = vmatpush3.bf16.msra.mxu0 %v10226_v15  ;;  %p7921_p13 = scmp.ne.s32.totalorder %s11094_s5, 0 }
 0x106   : > { %v644_v26 = vsel %vm639_vm1, %v624_v21, 0  ;;  %v641_v27 = vsel %vm639_vm1, %v629_v23, 0  ;;  %v752_v29 = vand.u32 4294901760, %v10228_v18  ;;  %8788 = vmatprep.subr.bf16.mxu0 %v10230_v19  ;;  %v8799_v50 = vpack.c.bf16 %v744_v17, %v737_v16 }
 0x107   : > { %s10195_s17 = scalar_select %p605_p4, %s11094_s5, 1  ;;  %v10240_v28 = vand.u32 4294901760, %v644_v26  ;;  %v759_v30 = vand.u32 4294901760, %v758_v22  ;;  %v10244_v31 = vand.u32 4294901760, %v641_v27  ;;  %v739_v32 = vsub.f32 %v737_v16, %v738_v24 }
 0x108   : > { %v746_v33 = vsub.f32 %v744_v17, %v745_v25  ;;  %v753_v35 = vsub.f32 %v10228_v18, %v752_v29  ;;  %v8803_v51 = vpack.c.bf16 %v758_v22, %v10228_v18  ;;  %v8815_v52 = vpack.c.bf16 %v745_v25, %v738_v24 }
 0x109   : > { %s607_s7 = scalar_lea.vmem %s11095_s25, %s10195_s17  ;;  %s610_s3 = scalar_lea.vmem %s11096_s18, %s10195_s17  ;;  %v726_v34 = vsub.f32 %v644_v26, %v10240_v28  ;;  %v760_v36 = vsub.f32 %v758_v22, %v759_v30  ;;  %v716_v37 = vsub.f32 %v641_v27, %v10244_v31  ;;  %v740_v38 = vand.u32 4294901760, %v739_v32  ;;  %8790 = vmatpush3.bf16.msra.mxu0 %v10230_v19 }
 0x10a   : > { %s613_s9 = scalar_lea.vmem %s11097_s8, %s10195_s17  ;;  %s616_s24 = scalar_lea.vmem %s11098_s6, %s10195_s17  ;;  %v747_v39 = vand.u32 4294901760, %v746_v33  ;;  %v754_v44 = vand.u32 4294901760, %v753_v35  ;;  %v1175_v53 = vsel %vm639_vm1, %v10218_v10, 0  ;;  %v8819_v57 = vpack.c.bf16 %v759_v30, %v752_v29 }
 0x10b   : > { %v727_v40 = vand.u32 4294901760, %v726_v34  ;;  %v717_v41 = vand.u32 4294901760, %v716_v37  ;;  %v761_v45 = vand.u32 4294901760, %v760_v36  ;;  %v10261_v56 = vand.u32 4294901760, %v1175_v53  ;;  %s10295_s6 = scalar_lea.vmem [#allocation13], %s10176_s22 }
 0x10c   : > { %v8791_v42 = vpack.c.bf16 %v747_v39, %v740_v38  ;;  %v1181_v58 = vand.u32 4294901760, %v631_v54  ;;  %v1184_v59 = vand.u32 4294901760, %v632_v55  ;;  %v1178_v63 = vsel %vm639_vm1, %v10221_v11, 0 }
 0x10d   : > { %v728_v43 = vsub.f32 %v726_v34, %v727_v40  ;;  %v718_v46 = vsub.f32 %v716_v37, %v717_v41  ;;  %v8795_v49 = vpack.c.bf16 %v761_v45, %v754_v44  ;;  %v10267_v62 = vsub.f32 %v1175_v53, %v10261_v56 }
 0x10e   : > { %8792 = vmatprep.subr.bf16.mxu0 %v8791_v42  ;;  %v1187_v3 = vand.u32 4294901760, %v633_v60  ;;  %v1190_v4 = vand.u32 4294901760, %v634_v61  ;;  %v1271_v5 = vsub.f32 %v631_v54, %v1181_v58  ;;  %v1278_v6 = vsub.f32 %v632_v55, %v1184_v59 }
 0x10f   : > { %v729_v47 = vand.u32 4294901760, %v728_v43  ;;  %v719_v48 = vand.u32 4294901760, %v718_v46  ;;  %v10271_v7 = vand.u32 4294901760, %v1178_v63  ;;  %v1251_v8 = vand.u32 4294901760, %v10267_v62 }
 0x110   : > { %v1272_v9 = vand.u32 4294901760, %v1271_v5  ;;  %v1279_v10 = vand.u32 4294901760, %v1278_v6  ;;  %v1285_v12 = vsub.f32 %v633_v60, %v1187_v3  ;;  %v1292_v13 = vsub.f32 %v634_v61, %v1190_v4 }
 0x111   : > { %8227 = vmatprep.mubr.f32.mxu0 %v719_v48  ;;  %v1260_v11 = vsub.f32 %v1178_v63, %v10271_v7  ;;  %v8831_v14 = vpack.c.bf16 %v1184_v59, %v1181_v58  ;;  %v1252_v16 = vsub.f32 %v10267_v62, %v1251_v8  ;;  %v8835_v23 = vpack.c.bf16 %v1190_v4, %v1187_v3 }
 0x112   : > { %8228 = vmatmul.mubr.f32.vlgmr.msra.gmra.mrb[0].mxu0 %v729_v47  ;;  %v1273_v17 = vsub.f32 %v1271_v5, %v1272_v9  ;;  %v1280_v18 = vsub.f32 %v1278_v6, %v1279_v10  ;;  %v1286_v20 = vand.u32 4294901760, %v1285_v12  ;;  %v1293_v21 = vand.u32 4294901760, %v1292_v13 }
 0x113   : > { %8794 = vmatpush3.bf16.msra.mxu0 %v8791_v42  ;;  %8238 = vmatprep.mubr.f32.mxu0 %v10244_v31  ;;  %v1261_v22 = vand.u32 4294901760, %v1260_v11  ;;  %v1253_v24 = vand.u32 4294901760, %v1252_v16  ;;  %v8863_v35 = vpack.c.bf16 %v1279_v10, %v1272_v9  ;;  %vm1708_vm3 = vcmask 523264  }
 0x114   : > { %8796 = vmatprep.subr.bf16.mxu0 %v8795_v49  ;;  %v1274_v25 = vand.u32 4294901760, %v1273_v17  ;;  %v1281_v26 = vand.u32 4294901760, %v1280_v18  ;;  %v1294_v27 = vsub.f32 %v1292_v13, %v1293_v21  ;;  %v8867_v36 = vpack.c.bf16 %v1293_v21, %v1286_v20 }
 0x115   : > { %v1262_v29 = vsub.f32 %v1260_v11, %v1261_v22  ;;  %v9661_v39 = vmov (!%p7921_p13), 0.0  }
 0x116   : > { %v8839_v30 = vpack.c.bf16 %v1281_v26, %v1274_v25  ;;  %v1295_v32 = vand.u32 4294901760, %v1294_v27  ;;  %1715 = vst.msk [vmem:[%s10292_s0] sm:$0xff] (!%p7921_p13), %vm639_vm1, %v9661_v39  ;;  %1716 = vst.msk [vmem:[%s10292_s0 + $0x8] sm:$0xff] (!%p7921_p13), %vm639_vm1, %v9661_v39 }
 0x117   : > { %8798 = vmatpush3.bf16.msra.mxu0 %v8795_v49  ;;  %v1263_v33 = vand.u32 4294901760, %v1262_v29 }
 0x118   : > { %8800 = vmatprep.subr.bf16.mxu0 %v8799_v50 }
 0x11a   : > { %8239 = vmatmul.mubr.f32.vlgmr.msra.gmra.mrb[0].mxu0 %v10240_v28 }
 0x11b   : > { %8802 = vmatpush3.bf16.msra.mxu0 %v8799_v50  ;;  %8249 = vmatprep.mubr.f32.mxu0 %v716_v37 }
 0x11c   : > { %8804 = vmatprep.subr.bf16.mxu0 %v8803_v51 }
 0x11f   : > { %8806 = vmatpush3.bf16.msra.mxu0 %v8803_v51 }
 0x120   : > { %8808 = vmatprep.subr.bf16.mxu0 %v10226_v15 }
 0x122   : > { %8250 = vmatmul.mubr.f32.vlgmr.msra.gmra.mrb[0].mxu0 %v726_v34  ;;  %v8847_v34 = vpack.c.bf16 %v1278_v6, %v1271_v5 }
 0x123   : > { %8810 = vmatpush3.bf16.msra.mxu0 %v10226_v15  ;;  %8260 = vmatprep.mubr.f32.mxu0 %v717_v41 }
 0x124   : > { %8812 = vmatprep.subr.bf16.mxu0 %v10230_v19 }
 0x127   : > { %8814 = vmatpush3.bf16.msra.mxu0 %v10230_v19 }
 0x128   : > { %8816 = vmatprep.subr.bf16.mxu0 %v8815_v52 }
 0x12a   : > { %8261 = vmatmul.mubr.f32.vlgmr.msra.gmra.mrb[0].mxu0 %v727_v40 }
 0x12b   : > { %8818 = vmatpush3.bf16.msra.mxu0 %v8815_v52  ;;  %8271 = vmatprep.mubr.f32.mxu0 %v10244_v31 }
 0x12c   : > { %8820 = vmatprep.subr.bf16.mxu0 %v8819_v57 }
 0x12f   : > { %8822 = vmatpush3.bf16.msra.mxu0 %v8819_v57 }
 0x130   : > { %8824 = vmatprep.subr.bf16.mxu0 %v10226_v15 }
 0x132   : > { %8272 = vmatmul.mubr.f32.vlgmr.msra.gmra.mrb[0].mxu0 %v10240_v28 }
 0x133   : > { %8826 = vmatpush3.bf16.msra.mxu0 %v10226_v15  ;;  %8282 = vmatprep.mubr.f32.mxu0 %v10244_v31  ;;  %v1287_v15 = vsub.f32 %v1285_v12, %v1286_v20 }
 0x134   : > { %8828 = vmatprep.subr.bf16.mxu0 %v10230_v19 }
 0x135   : > { %v1288_v31 = vand.u32 4294901760, %v1287_v15 }
 0x137   : > { %8830 = vmatpush3.bf16.msra.mxu0 %v10230_v19  ;;  %v8843_v19 = vpack.c.bf16 %v1295_v32, %v1288_v31 }
 0x138   : > { %8832 = vmatprep.subr.bf16.mxu0 %v8831_v14 }
 0x13a   : > { %8283 = vmatmul.mubr.f32.vlgmr.msra.gmra.mrb[0].mxu0 %v10240_v28  ;;  %v8851_v28 = vpack.c.bf16 %v1292_v13, %v1285_v12 }
 0x13b   : > { %8834 = vmatpush3.bf16.msra.mxu0 %v8831_v14  ;;  %8293 = vmatprep.mubr.f32.mxu0 %v1253_v24 }
 0x13c   : > { %8836 = vmatprep.subr.bf16.mxu0 %v8835_v23 }
 0x13f   : > { %8838 = vmatpush3.bf16.msra.mxu0 %v8835_v23 }
 0x140   : > { %8840 = vmatprep.subr.bf16.mxu0 %v8839_v30 }
 0x142   : > { %8294 = vmatmul.mubr.f32.vlgmr.msra.gmra.mrb[0].mxu0 %v1263_v33 }
 0x143   : > { %8842 = vmatpush3.bf16.msra.mxu0 %v8839_v30  ;;  %8304 = vmatprep.mubr.f32.mxu0 %v10261_v56 }
 0x144   : > { %8844 = vmatprep.subr.bf16.mxu0 %v8843_v19 }
 0x147   : > { %8846 = vmatpush3.bf16.msra.mxu0 %v8843_v19 }
 0x148   : > { %8848 = vmatprep.subr.bf16.mxu0 %v8847_v34 }
 0x14a   : > { %8305 = vmatmul.mubr.f32.vlgmr.msra.gmra.mrb[0].mxu0 %v10271_v7 }
 0x14b   : > { %8850 = vmatpush3.bf16.msra.mxu0 %v8847_v34  ;;  %8315 = vmatprep.mubr.f32.mxu0 %v10267_v62 }
 0x14c   : > { %8852 = vmatprep.subr.bf16.mxu0 %v8851_v28 }
 0x14f   : > { %8854 = vmatpush3.bf16.msra.mxu0 %v8851_v28 }
 0x150   : > { %8856 = vmatprep.subr.bf16.mxu0 %v8831_v14 }
 0x152   : > { %8316 = vmatmul.mubr.f32.vlgmr.msra.gmra.mrb[0].mxu0 %v1260_v11 }
 0x153   : > { %8858 = vmatpush3.bf16.msra.mxu0 %v8831_v14  ;;  %8326 = vmatprep.mubr.f32.mxu0 %v1251_v8 }
 0x154   : > { %8860 = vmatprep.subr.bf16.mxu0 %v8835_v23 }
 0x157   : > { %8862 = vmatpush3.bf16.msra.mxu0 %v8835_v23 }
 0x158   : > { %8864 = vmatprep.subr.bf16.mxu0 %v8863_v35 }
 0x15a   : > { %8327 = vmatmul.mubr.f32.vlgmr.msra.gmra.mrb[0].mxu0 %v1261_v22 }
 0x15b   : > { %8866 = vmatpush3.bf16.msra.mxu0 %v8863_v35  ;;  %8337 = vmatprep.mubr.f32.mxu0 %v10261_v56 }
 0x15c   : > { %8868 = vmatprep.subr.bf16.mxu0 %v8867_v36 }
 0x15f   : > { %8870 = vmatpush3.bf16.msra.mxu0 %v8867_v36 }
 0x160   : > { %8872 = vmatprep.subr.bf16.mxu0 %v8831_v14 }
 0x162   : > { %8338 = vmatmul.mubr.f32.vlgmr.msra.gmra.mrb[0].mxu0 %v10271_v7 }
 0x163   : > { %8874 = vmatpush3.bf16.msra.mxu0 %v8831_v14  ;;  %8348 = vmatprep.mubr.f32.mxu0 %v10261_v56 }
 0x164   : > { %8876 = vmatprep.subr.bf16.mxu0 %v8835_v23 }
 0x167   : > { %8878 = vmatpush3.bf16.msra.mxu0 %v8835_v23 }
 0x16a   : > { %8349 = vmatmul.mubr.f32.vlgmr.msra.gmra.mrb[0].mxu0 %v10271_v7 }
 0x239   : > { %1714 = sbr.rel (%p7921_p13) target bundleno = 576 (0x240), region = 80 }
 0x23d   : > { %v8350_v37 = vpop.f32.mrb[0].mxu0 }
 0x23e   : > { %1710 = vst.msk [vmem:[#allocation2 + $0x8] sm:$0xff] %vm1708_vm3, %v8350_v37  ;;  %v1698_v38 = vpop.f32.mrb[1].mxu0 }
 0x23f   : > { %1709 = vst.msk [vmem:[#allocation2] sm:$0xff] %vm1708_vm3, %v1698_v38 }
 0x240 PF: > { %v10307_v40 = vld [vmem:[%s607_s7] sm:$0x1]  ;;  %v1723_v41 = vcvt.s32.f32 %v10192_v1  ;;  %v1727_v42 = vsub.s32 0, %v10192_v1  ;;  %s9662_s14 = smov 112   ;;  %s9663_s8 = smov 16   ;;  %v9664_v53 = vmov 0.0  }
 0x241   : > { %8351 = vmatprep.subr.mxu1 %v9664_v53  ;;  %vm9665_vm4 = vmmov 0   ;;  %v10333_v58 = vld [vmem:[%s610_s3] ss:$0 sm:$0xff]  ;;  %s9666_s12 = smov 96   ;;  %v9667_v60 = vmov 0.0|0.0   ;;  %vm1769_vm5 = vcmask 130048  }
 0x242   : > { %v1728_v43 = vrot.slane %v10307_v40, %v1727_v42  ;;  %v1733_v44 = vadd.f32 1.0, %v1723_v41  ;;  %v1738_v45 = vsub.f32 7.0, %v1723_v41  ;;  %8353 = vmatprep.mubr.msk.f32.mxu1 %vm9665_vm4, %v9664_v53  ;;  %8529 = vmatprep.mubr.msk.f32.mxu0 %vm9665_vm4, %v9664_v53  ;;  %s11102_s25 = scalar_lea.vmem [#allocation9], %s10176_s22  ;;  %v10425_v39 = vand.u32 127, %v621_v0  ;;  %s9668_s22 = smov 80  }
 0x243   : > { %8921 = vmatprep.subr.bf16.mxu0 %v9667_v60  ;;  %v1757_v21 = vld [vmem:[%s11102_s25] sm:$0xff]  ;;  %s11103_s7 = smov %s11102_s25  ;;  %vm2702_vm8 = vcmask 64512   ;;  %s11104_s13 = scalar_lea.vmem [#allocation11], %s10183_s16 }
 0x244   : > { %v1734_v46 = vsub.f32 0.0, %v1733_v44  ;;  %v1739_v47 = vmul.f32 %v1738_v45, %v1728_v43  ;;  %v1730_v48 = vmul.f32 %v1728_v43, %v1723_v41  ;;  %v1758_v22 = vld [vmem:[%s11103_s7 + $0x8] sm:$0xff]  ;;  %v2241_v23 = vand.u32 4294901760, %v1757_v21  ;;  %s11105_s15 = smov %s11104_s13  ;;  %s11110_s17 = sld [smem:[#allocation22_spill]] }
 0x245   : > { %v2244_v24 = vand.u32 4294901760, %v1758_v22  ;;  %vm2237_vm6 = vcmp.eq.s32.totalorder %v10425_v39, %v10192_v1  ;;  %vm2236_vm7 = vcmp.lt.s32.totalorder %v10425_v39, %v10192_v1  ;;  %vm1744_vm9 = vcmp.eq.s32.totalorder %v10192_v1, %v10425_v39  ;;  %s11111_s4 = sld [smem:[#allocation38_spill]]  ;;  %s7649_s11 = sshll.u32 %s10295_s6, 4  ;;  %s10830_s11 = int_to_ptr.vmem [resolvable:$true] %s7649_s11 }
 0x246   : > { %v1735_v49 = vmul.f32 %v1734_v46, %v1728_v43  ;;  %v10314_v51 = vld [vmem:[#allocation2] sm:$0xff]  ;;  %v1740_v56 = vmul.f32 1.442695, %v1739_v47  ;;  %v1731_v3 = vmul.f32 1.442695, %v1730_v48  ;;  %v2319_v25 = vsub.f32 %v1757_v21, %v2241_v23  ;;  %s11112_s7 = sld [smem:[#allocation51_spill]] }
 0x247   : > { %2229 = vrot.lane.b32.xlu1 %v10314_v51, %s9662_s14  ;;  %v2227_v59 = vmul.f32 %v10333_v58, %v10314_v51  ;;  %v2326_v26 = vsub.f32 %v1758_v22, %v2244_v24  ;;  %v10376_v31 = vpack.c.bf16 %v2244_v24, %v2241_v23  ;;  %vm1745_vm10 = vcmp.eq.s32.totalorder %v10198_v2, %v10425_v39  ;;  %s9462_s16 = scalar_lea.vmem %s10830_s11, 256  ;;  %s9669_s18 = smov [#allocation13]  }
 0x248   : > { %v1736_v50 = vmul.f32 1.442695, %v1735_v49  ;;  %v2320_v15 = vand.u32 4294901760, %v2319_v25  ;;  %p9463_p6 = scmp.ne.s32.totalorder %s10830_s11, %s9462_s16 }
 0x249   : > { %v2327_v27 = vand.u32 4294901760, %v2326_v26  ;;  %v10389_v34 = vpack.c.bf16 %v2326_v26, %v2319_v25 }
 0x24a   : > { %9292 = vpow2.f32 %v1736_v50  ;;  %v2321_v29 = vsub.f32 %v2319_v25, %v2320_v15  ;;  %v1746_v25 = vmul.f32 8.0, %v10307_v40 }
 0x24b   : > { %9294 = vpow2.f32 %v1740_v56  ;;  %v2328_v30 = vsub.f32 %v2326_v26, %v2327_v27  ;;  %v10400_v28 = vpack.c.bf16 %v2327_v27, %v2320_v15  ;;  %p11114_p10 = scmp.ne.s32.totalorder %s11111_s4, 0 }
 0x24c   : > { %9296 = vpow2.f32 %v1731_v3  ;;  %v2322_v32 = vand.u32 4294901760, %v2321_v29  ;;  %v1747_v29 = vmul.f32 1.442695, %v1746_v25 }
 0x24d   : > { %v2329_v33 = vand.u32 4294901760, %v2328_v30  ;;  %p9464_p5 = pnand %p9463_p6, %p11114_p10 }
 0x24f   : > { %v10382_v19 = vpack.c.bf16 %v2329_v33, %v2322_v32  ;;  %p9465_p0 = pneg %p9464_p5 }
 0x254   : > { %v9293_v52 = vpop.eup %9292 }
 0x255   : > { %1762 = vrot.lane.b32.xlu0 %v9293_v52, %s9663_s8  ;;  %v9295_v61 = vpop.eup %9294 }
 0x256   : > { %v10341_v4 = vpop.eup %9296 }
 0x257   : > { %v1760_v5 = vmul.f32 %v10341_v4, %v10314_v51 }
 0x259   : > { %v1771_v6 = vsel %vm1769_vm5, %v1760_v5, 0 }
 0x25a   : > { %v10346_v7 = vand.u32 4294901760, %v1771_v6 }
 0x25c   : > { %v1842_v8 = vsub.f32 %v1771_v6, %v10346_v7  ;;  %v7925_v6 = vmul.f32 -1.442695, %v10314_v51 }
 0x25e   : > { %v10349_v9 = vand.u32 4294901760, %v1842_v8  ;;  %9298 = vpow2.f32 %v7925_v6 }
 0x260   : > { %v1844_v10 = vsub.f32 %v1842_v8, %v10349_v9 }
 0x262   : > { %v1845_v14 = vand.u32 4294901760, %v1844_v10 }
 0x2b9   : > { %v2230_v57 = vpop.permute.xlu1 %2229 }
 0x2ba   : > { %v2232_v62 = vmul.f32 %v2230_v57, %v2227_v59 }
 0x2bc   : > { %v2233_v63 = vsel %vm1769_vm5, %v2232_v62, 0.0 }
 0x2bd   : > { %2234 = vadd.xlane.f32.xlu1 %v2233_v63 }
 0x2c7   : > { %v10323_v54 = vpop.permute.xlu0 %1762 }
 0x2c8   : > { %v1765_v55 = vmul.f32 %v10323_v54, %v10314_v51 }
 0x2ca   : > { %1767 = vrot.lane.b32.xlu0 %v1765_v55, %s9662_s14 }
 0x2ce   : > { %2699 = vrot.lane.b32.xlu0 %v10314_v51, %s9666_s12 }
 0x2d2   : > { %3153 = vrot.lane.b32.xlu0 %v9295_v61, %s9663_s8 }
 0x33c   : > { %v1768_v12 = vpop.permute.xlu0 %1767 }
 0x33d   : > { %v1773_v13 = vsel %vm1769_vm5, %v1768_v12, 0  ;;  %v10474_v12 = vld [vmem:[#allocation2 + $0x8] sm:$0xff] }
 0x33e   : > { %v1776_v11 = vand.u32 4294901760, %v1773_v13 }
 0x340   : > { %v1853_v16 = vsub.f32 %v1773_v13, %v1776_v11  ;;  %8352 = vmatpush3.xpose.msra.mxu1 %v1776_v11  ;;  %v2700_v35 = vpop.permute.xlu0 %2699 }
 0x341   : > { %8356 = vmatprep.subr.mxu1 %v9664_v53  ;;  %v10415_v36 = vand.u32 4294901760, %v2700_v35 }
 0x342   : > { %v1854_v17 = vand.u32 4294901760, %v1853_v16 }
 0x343   : > { %8354 = vmatmul.mubr.f32.vlgmr.msra.gmra.mrb[0].mxu1 %v1845_v14  ;;  %v10435_v44 = vsub.f32 %v2700_v35, %v10415_v36  ;;  %v1721_v35 = vld [vmem:[%s11104_s13] sm:$0xff]  ;;  %s11113_s13 = sand.u32 1, %s11110_s17  }
 0x344   : > { %v1855_v18 = vsub.f32 %v1853_v16, %v1854_v17  ;;  %8358 = vmatprep.mubr.msk.f32.mxu1 %vm9665_vm4, %v9664_v53  ;;  %v10419_v37 = vpop.permute.xlu0 %3153 }
 0x345   : > { %v3156_v38 = vmul.f32 %v10419_v37, %v10314_v51  ;;  %v10442_v48 = vand.u32 4294901760, %v10435_v44 }
 0x346   : > { %v1856_v20 = vand.u32 4294901760, %v1855_v18 }
 0x347   : > { %3158 = vrot.lane.b32.xlu1 %v3156_v38, %s9662_s14  ;;  %v2786_v52 = vsub.f32 %v10435_v44, %v10442_v48  ;;  %v1722_v38 = vld [vmem:[%s11105_s15 + $0x8] sm:$0xff]  ;;  %s10834_s15 = scalar_lea.sflag [#allocation14], %s11113_s13 }
 0x348   : > { %8357 = vmatpush3.xpose.msra.mxu1 %v1856_v20 }
 0x349   : > { %8361 = vmatprep.subr.mxu1 %v9664_v53  ;;  %v10446_v57 = vand.u32 4294901760, %v2786_v52 }
 0x34a   : > { %v2235_v41 = vpop.xlane.xlu1 %2234 }
 0x34b   : > { %8359 = vmatmul.mubr.f32.vlgmr.msra.gmra.mrb[0].mxu1 %v10346_v7  ;;  %v2238_v43 = vsel %vm2237_vm6, %v2235_v41, 0.0  ;;  %v4241_v41 = vand.u32 4294901760, %v1721_v35 }
 0x34c   : > { %8362 = vmatpush3.xpose.msra.mxu1 %v1853_v16  ;;  %8363 = vmatprep.mubr.msk.f32.mxu1 %vm9665_vm4, %v9664_v53 }
 0x34d   : > { %8366 = vmatprep.subr.mxu1 %v9664_v53  ;;  %v4319_v40 = vsub.f32 %v1721_v35, %v4241_v41 }
 0x353   : > { %8364 = vmatmul.mubr.f32.vlgmr.msra.gmra.mrb[0].mxu1 %v1842_v8 }
 0x354   : > { %8367 = vmatpush3.xpose.msra.mxu1 %v1776_v11  ;;  %8368 = vmatprep.mubr.msk.f32.mxu1 %vm9665_vm4, %v9664_v53 }
 0x355   : > { %8371 = vmatprep.subr.mxu1 %v9664_v53 }
 0x35b   : > { %8369 = vmatmul.mubr.f32.vlgmr.msra.gmra.mrb[0].mxu1 %v10349_v9 }
 0x35c   : > { %8372 = vmatpush3.xpose.msra.mxu1 %v1854_v17  ;;  %8373 = vmatprep.mubr.msk.f32.mxu1 %vm9665_vm4, %v9664_v53 }
 0x35d   : > { %8376 = vmatprep.subr.mxu1 %v9664_v53 }
 0x363   : > { %8374 = vmatmul.mubr.f32.vlgmr.msra.gmra.mrb[0].mxu1 %v10346_v7 }
 0x364   : > { %8377 = vmatpush3.xpose.msra.mxu1 %v1776_v11  ;;  %8378 = vmatprep.mubr.msk.f32.mxu1 %vm9665_vm4, %v9664_v53 }
 0x365   : > { %8879 = vmatprep.subr.bf16.mxu1 %v9667_v60 }
 0x36b   : > { %8379 = vmatmul.mubr.f32.vlgmr.msra.gmra.mrb[0].mxu1 %v10346_v7 }
 0x36c   : > { %8881 = vmatpush3.bf16.msra.mxu1 %v10376_v31  ;;  %8385 = vmatprep.mubr.msk.f32.mxu1 %vm9665_vm4, %v9664_v53 }
 0x36d   : > { %8882 = vmatprep.subr.bf16.mxu1 %v9667_v60 }
 0x36f   : > { %8386 = vmatmul.mubr.f32.vlgmr.msra.gmra.mrb[2].mxu1 %v1845_v14 }
 0x370   : > { %8884 = vmatpush3.bf16.msra.mxu1 %v10382_v19  ;;  %8392 = vmatprep.mubr.msk.f32.mxu1 %vm9665_vm4, %v9664_v53 }
 0x371   : > { %8885 = vmatprep.subr.bf16.mxu1 %v9667_v60 }
 0x377   : > { %8393 = vmatmul.mubr.f32.vlgmr.msra.gmra.mrb[2].mxu1 %v10346_v7 }
 0x378   : > { %8887 = vmatpush3.bf16.msra.mxu1 %v10389_v34  ;;  %8399 = vmatprep.mubr.msk.f32.mxu1 %vm9665_vm4, %v9664_v53 }
 0x379   : > { %8888 = vmatprep.subr.bf16.mxu1 %v9667_v60 }
 0x37f   : > { %8400 = vmatmul.mubr.f32.vlgmr.msra.gmra.mrb[2].mxu1 %v1842_v8 }
 0x380   : > { %8890 = vmatpush3.bf16.msra.mxu1 %v10376_v31  ;;  %8406 = vmatprep.mubr.msk.f32.mxu1 %vm9665_vm4, %v9664_v53 }
 0x381   : > { %8891 = vmatprep.subr.bf16.mxu1 %v9667_v60 }
 0x387   : > { %8407 = vmatmul.mubr.f32.vlgmr.msra.gmra.mrb[2].mxu1 %v10349_v9 }
 0x388   : > { %8893 = vmatpush3.bf16.msra.mxu1 %v10400_v28  ;;  %8413 = vmatprep.mubr.msk.f32.mxu1 %vm9665_vm4, %v9664_v53 }
 0x389   : > { %8894 = vmatprep.subr.bf16.mxu1 %v9667_v60 }
 0x38f   : > { %8414 = vmatmul.mubr.f32.vlgmr.msra.gmra.mrb[2].mxu1 %v10346_v7 }
 0x390   : > { %8896 = vmatpush3.bf16.msra.mxu1 %v10376_v31  ;;  %8420 = vmatprep.mubr.msk.f32.mxu1 %vm9665_vm4, %v9664_v53 }
 0x391   : > { %8423 = vmatprep.subr.mxu1 %v9664_v53 }
 0x397   : > { %8421 = vmatmul.mubr.f32.vlgmr.msra.gmra.mrb[2].mxu1 %v10346_v7  ;;  %v9299_v7 = vpop.eup %9298 }
 0x398   : > { %8425 = vmatprep.mubr.msk.f32.mxu1 %vm9665_vm4, %v9664_v53  ;;  %8424 = vmatpush3.msra.mxu1 %v10415_v36  ;;  %v4228_v8 = vadd.f32 1.0, %v9299_v7 }
 0x399   : > { %8428 = vmatprep.subr.mxu1 %v9664_v53 }
 0x39a   : > { %9300 = vrcp.f32 %v4228_v8 }
 0x39b   : > { %9302 = vpow2.f32 %v1747_v29 }
 0x3a4   : > { %v9301_v9 = vpop.eup %9300 }
 0x3a5   : > { %v4231_v10 = vmul.f32 %v9301_v9, %v10314_v51  ;;  %v4705_v51 = vmul.f32 %v10474_v12, %v10323_v54 }
 0x3b9   : > { %v3159_v5 = vpop.permute.xlu1 %3158 }
 0x43e   : > { %v2217_v45 = vpop.f32.mrb[0].mxu1 }
 0x43f   : > { %v2239_v0 = vsel %vm2236_vm7, %v2217_v45, %v2238_v43  ;;  %v8380_v46 = vpop.f32.mrb[1].mxu1  ;;  %v4244_v43 = vand.u32 4294901760, %v1722_v38 }
 0x440   : > { %v2704_v47 = vsel %vm2702_vm8, %v2239_v0, 0  ;;  %v4320_v46 = vand.u32 4294901760, %v4319_v40 }
 0x441   : > { %v2772_v49 = vand.u32 4294901760, %v2704_v47  ;;  %v4326_v0 = vsub.f32 %v1722_v38, %v4244_v43 }
 0x443   : > { %v2773_v50 = vsub.f32 %v2704_v47, %v2772_v49  ;;  %v4327_v47 = vand.u32 4294901760, %v4326_v0 }
 0x445   : > { %v2774_v55 = vand.u32 4294901760, %v2773_v50  ;;  %v4328_v52 = vsub.f32 %v4326_v0, %v4327_v47 }
 0x447   : > { %v2775_v56 = vsub.f32 %v2773_v50, %v2774_v55 }
 0x449   : > { %v2776_v59 = vand.u32 4294901760, %v2775_v56  ;;  %v4329_v56 = vand.u32 4294901760, %v4328_v52 }
 0x44b   : > { %8426 = vmatmul.mubr.f32.vlgmr.msra.gmra.mrb[2].mxu1 %v2776_v59 }
 0x44c   : > { %8429 = vmatpush3.msra.mxu1 %v10446_v57  ;;  %8430 = vmatprep.mubr.msk.f32.mxu1 %vm9665_vm4, %v9664_v53 }
 0x44d   : > { %8433 = vmatprep.subr.mxu1 %v9664_v53 }
 0x453   : > { %8431 = vmatmul.mubr.f32.vlgmr.msra.gmra.mrb[2].mxu1 %v2772_v49 }
 0x454   : > { %8434 = vmatpush3.msra.mxu1 %v10435_v44  ;;  %8435 = vmatprep.mubr.msk.f32.mxu1 %vm9665_vm4, %v9664_v53 }
 0x455   : > { %8438 = vmatprep.subr.mxu1 %v9664_v53 }
 0x45b   : > { %8436 = vmatmul.mubr.f32.vlgmr.msra.gmra.mrb[2].mxu1 %v2773_v50  ;;  %v4321_v50 = vsub.f32 %v4319_v40, %v4320_v46 }
 0x45c   : > { %8439 = vmatpush3.msra.mxu1 %v10415_v36  ;;  %8440 = vmatprep.mubr.msk.f32.mxu1 %vm9665_vm4, %v9664_v53 }
 0x45d   : > { %8443 = vmatprep.subr.mxu1 %v9664_v53 }
 0x463   : > { %8441 = vmatmul.mubr.f32.vlgmr.msra.gmra.mrb[2].mxu1 %v2774_v55  ;;  %v4322_v55 = vand.u32 4294901760, %v4321_v50 }
 0x464   : > { %8444 = vmatpush3.msra.mxu1 %v10442_v48  ;;  %8445 = vmatprep.mubr.msk.f32.mxu1 %vm9665_vm4, %v9664_v53 }
 0x465   : > { %8448 = vmatprep.subr.mxu1 %v9664_v53  ;;  %v10508_v59 = vpack.c.bf16 %v4329_v56, %v4322_v55 }
 0x46b   : > { %8446 = vmatmul.mubr.f32.vlgmr.msra.gmra.mrb[2].mxu1 %v2772_v49 }
 0x46c   : > { %8449 = vmatpush3.msra.mxu1 %v10415_v36  ;;  %8450 = vmatprep.mubr.msk.f32.mxu1 %vm9665_vm4, %v9664_v53 }
 0x46d   : > { %8453 = vmatprep.subr.mxu1 %v10415_v36 }
 0x473   : > { %8451 = vmatmul.mubr.f32.vlgmr.msra.gmra.mrb[2].mxu1 %v2772_v49  ;;  %v10504_v49 = vpack.c.bf16 %v4244_v43, %v4241_v41 }
 0x474   : > { %8454 = vmatpush3.msra.mxu1 %v10415_v36 }
 0x475   : > { %8458 = vmatprep.subr.mxu1 %v10446_v57  ;;  %8923 = vmatpush3.bf16.msra.mxu0 %v10504_v49 }
 0x476   : > { %8924 = vmatprep.subr.bf16.mxu0 %v9667_v60 }
 0x546   : > { %v3148_v61 = vpop.f32.mrb[2].mxu1 }
 0x547   : > { %v4196_v62 = vmul.f32 0.125, %v3148_v61  ;;  %v8452_v63 = vpop.f32.mrb[3].mxu1  ;;  %v9303_v61 = vpop.eup %9302 }
 0x549   : > { %v4197_v3 = vsel %vm1769_vm5, %v4196_v62, 0.0 }
 0x54a   : > { %4198 = vadd.xlane.f32.xlu0 %v4197_v3  ;;  %v10524_v3 = vpack.c.bf16 %v4327_v47, %v4320_v46 }
 0x577   : > { %3161 = vxpose.xlu0.b32.start.end [1/1] (short) (narrow) %v3159_v5, 16 }
 0x5a4   : > { %4233 = vrot.lane.b32.xlu0 %v4231_v10, %s9668_s22 }
 0x5a8   : > { %5630 = vrot.lane.b32.xlu0 %v10474_v12, %s9666_s12 }
 0x5d7   : > { %v4199_v13 = vpop.xlane.xlu0 %4198 }
 0x5d8   : > { %v4201_v11 = vmul.f32 0.0625, %v4199_v13 }
 0x5da   : > { %v10478_v14 = vsub.f32 %v4196_v62, %v4201_v11  ;;  %v10515_v62 = vpack.c.bf16 %v4326_v0, %v4319_v40 }
 0x5dc   : > { %v4203_v16 = vmul.f32 %v10478_v14, %v10478_v14 }
 0x5de   : > { %v4204_v17 = vsel %vm1769_vm5, %v4203_v16, 0.0 }
 0x5df   : > { %4205 = vadd.xlane.f32.xlu1 %v4204_v17  ;;  %v5160_v17 = vmul.f32 %v10333_v58, %v10474_v12 }
 0x5f0   : > { %4707 = vrot.lane.b32.xlu1 %v4705_v51, %s9662_s14 }
 0x5f4   : > { %5162 = vrot.lane.b32.xlu1 %v10474_v12, %s9662_s14 }
 0x5f7   : > { %v3177_v18 = vpop.trf.xlu0 }
 0x5f8   : > { %v3194_v20 = vsel %vm2702_vm8, %v3177_v18, 0 }
 0x5f9   : > { %v10489_v21 = vand.u32 4294901760, %v3194_v20 }
 0x5fb   : > { %v3266_v22 = vsub.f32 %v3194_v20, %v10489_v21  ;;  %v3178_v23 = vpop.trf.xlu0 }
 0x5fc   : > { %v3197_v24 = vsel %vm2702_vm8, %v3178_v23, 0  ;;  %v10601_v23 = vld [vmem:[%s616_s24] ss:$0 sm:$0xff]  ;;  %s11108_s24 = sld [smem:[#allocation26_spill]] }
 0x5fd   : > { %v3267_v54 = vand.u32 4294901760, %v3266_v22  ;;  %v10494_v26 = vand.u32 4294901760, %v3197_v24 }
 0x5ff   : > { %v3276_v15 = vsub.f32 %v3197_v24, %v10494_v26  ;;  %v3268_v27 = vsub.f32 %v3266_v22, %v3267_v54 }
 0x601   : > { %v3277_v30 = vand.u32 4294901760, %v3276_v15  ;;  %v3269_v32 = vand.u32 4294901760, %v3268_v27  ;;  %v6082_v27 = vmul.f32 %v10474_v12, %v10419_v37 }
 0x603   : > { %v3278_v33 = vsub.f32 %v3276_v15, %v3277_v30  ;;  %8455 = vmatprep.mubr.f32.mxu1 %v3269_v32 }
 0x605   : > { %v3279_v45 = vand.u32 4294901760, %v3278_v33  ;;  %v4704_v33 = vmul.f32 %v10341_v4, %v10474_v12 }
 0x607   : > { %8456 = vmatmul.mubr.f32.vlgmr.msra.gmra.mrb[4].mxu1 %v3279_v45  ;;  %v4710_v37 = vsel %vm1769_vm5, %v4704_v33, 0 }
 0x608   : > { %8459 = vmatpush3.msra.mxu1 %v10446_v57  ;;  %8460 = vmatprep.mubr.f32.mxu1 %v10489_v21  ;;  %v1753_v57 = vrot.slane %v9303_v61, %v1727_v42  ;;  %v10624_v38 = vand.u32 4294901760, %v4710_v37 }
 0x609   : > { %8463 = vmatprep.subr.mxu1 %v10435_v44 }
 0x60a   : > { %v1755_v63 = vsel %vm1744_vm9, %v1753_v57, 0.0  ;;  %v1756_v5 = vsel %vm1745_vm10, %v1753_v57, 0.0  ;;  %v10631_v41 = vsub.f32 %v4710_v37, %v10624_v38 }
 0x60b   : > { %v3692_v7 = vsel %vm1769_vm5, %v1756_v5, 0 }
 0x60c   : > { %v10535_v8 = vand.u32 4294901760, %v3692_v7  ;;  %v10638_v45 = vand.u32 4294901760, %v10631_v41 }
 0x60e   : > { %v10542_v9 = vsub.f32 %v3692_v7, %v10535_v8  ;;  %v4783_v0 = vsub.f32 %v10631_v41, %v10638_v45 }
 0x60f   : > { %8461 = vmatmul.mubr.f32.vlgmr.msra.gmra.mrb[4].mxu1 %v10494_v26 }
 0x610   : > { %8464 = vmatpush3.msra.mxu1 %v10435_v44  ;;  %8465 = vmatprep.mubr.f32.mxu1 %v3266_v22  ;;  %v3689_v44 = vsel %vm1769_vm5, %v1755_v63, 0  ;;  %v10550_v10 = vand.u32 4294901760, %v10542_v9  ;;  %v4784_v47 = vand.u32 4294901760, %v4783_v0 }
 0x611   : > { %8468 = vmatprep.subr.mxu1 %v10415_v36  ;;  %v10526_v42 = vand.u32 4294901760, %v3689_v44 }
 0x612   : > { %v3774_v11 = vsub.f32 %v10542_v9, %v10550_v10 }
 0x613   : > { %v10531_v6 = vsub.f32 %v3689_v44, %v10526_v42 }
 0x615   : > { %v10538_v2 = vand.u32 4294901760, %v10531_v6 }
 0x616   : > { %v4234_v24 = vpop.permute.xlu0 %4233 }
 0x617   : > { %8466 = vmatmul.mubr.f32.vlgmr.msra.gmra.mrb[4].mxu1 %v3276_v15 }
 0x618   : > { %8469 = vmatpush3.msra.mxu1 %v10415_v36  ;;  %8470 = vmatprep.mubr.f32.mxu1 %v3267_v54 }
 0x619   : > { %8473 = vmatprep.subr.mxu1 %v10442_v48 }
 0x61a   : > { %v5631_v56 = vpop.permute.xlu0 %5630 }
 0x61b   : > { %v10667_v61 = vand.u32 4294901760, %v5631_v56 }
 0x61d   : > { %v10670_v57 = vsub.f32 %v5631_v56, %v10667_v61 }
 0x61f   : > { %8471 = vmatmul.mubr.f32.vlgmr.msra.gmra.mrb[4].mxu1 %v3277_v30  ;;  %v10675_v63 = vand.u32 4294901760, %v10670_v57 }
 0x620   : > { %8474 = vmatpush3.msra.mxu1 %v10442_v48  ;;  %8475 = vmatprep.mubr.f32.mxu1 %v10489_v21  ;;  %v3764_v48 = vsub.f32 %v10531_v6, %v10538_v2 }
 0x621   : > { %8478 = vmatprep.subr.mxu1 %v10415_v36  ;;  %v5716_v44 = vsub.f32 %v10670_v57, %v10675_v63 }
 0x622   : > { %v10552_v13 = vand.u32 4294901760, %v3764_v48 }
 0x623   : > { %v10679_v5 = vand.u32 4294901760, %v5716_v44 }
 0x627   : > { %8476 = vmatmul.mubr.f32.vlgmr.msra.gmra.mrb[4].mxu1 %v10494_v26 }
 0x628   : > { %8479 = vmatpush3.msra.mxu1 %v10415_v36  ;;  %8480 = vmatprep.mubr.f32.mxu1 %v10489_v21  ;;  %v10560_v36 = vand.u32 4294901760, %v3774_v11  ;;  %v10593_v21 = vld [vmem:[%s613_s9] ss:$0 sm:$0xff]  ;;  %s11109_s9 = sld [smem:[#allocation27_spill]] }
 0x629   : > { %8898 = vmatprep.subr.bf16.mxu1 %v10376_v31 }
 0x62e   : > { %s7934_s8 = sshll.u32 %s11109_s9, 2 }
 0x62f   : > { %8481 = vmatmul.mubr.f32.vlgmr.msra.gmra.mrb[4].mxu1 %v10494_v26 }
 0x630   : > { %8900 = vmatpush3.bf16.msra.mxu1 %v10376_v31  ;;  %8487 = vmatprep.mubr.f32.mxu1 %v10552_v13 }
 0x631   : > { %8902 = vmatprep.subr.bf16.mxu1 %v10382_v19 }
 0x637   : > { %8488 = vmatmul.mubr.f32.vlgmr.msra.gmra.mrb[4].mxu1 %v10560_v36 }
 0x638   : > { %8904 = vmatpush3.bf16.msra.mxu1 %v10382_v19  ;;  %8494 = vmatprep.mubr.f32.mxu1 %v10526_v42 }
 0x639   : > { %8906 = vmatprep.subr.bf16.mxu1 %v10389_v34 }
 0x63f   : > { %8495 = vmatmul.mubr.f32.vlgmr.msra.gmra.mrb[4].mxu1 %v10535_v8 }
 0x640   : > { %8908 = vmatpush3.bf16.msra.mxu1 %v10389_v34  ;;  %8501 = vmatprep.mubr.f32.mxu1 %v10531_v6 }
 0x641   : > { %8910 = vmatprep.subr.bf16.mxu1 %v10376_v31 }
 0x647   : > { %8502 = vmatmul.mubr.f32.vlgmr.msra.gmra.mrb[4].mxu1 %v10542_v9 }
 0x648   : > { %8912 = vmatpush3.bf16.msra.mxu1 %v10376_v31  ;;  %8508 = vmatprep.mubr.f32.mxu1 %v10538_v2 }
 0x649   : > { %8914 = vmatprep.subr.bf16.mxu1 %v10400_v28 }
 0x64f   : > { %8509 = vmatmul.mubr.f32.vlgmr.msra.gmra.mrb[4].mxu1 %v10550_v10 }
 0x650   : > { %8916 = vmatpush3.bf16.msra.mxu1 %v10400_v28  ;;  %8515 = vmatprep.mubr.f32.mxu1 %v10526_v42 }
 0x651   : > { %8918 = vmatprep.subr.bf16.mxu1 %v10376_v31 }
 0x657   : > { %8516 = vmatmul.mubr.f32.vlgmr.msra.gmra.mrb[4].mxu1 %v10535_v8 }
 0x658   : > { %8920 = vmatpush3.bf16.msra.mxu1 %v10376_v31  ;;  %8522 = vmatprep.mubr.f32.mxu1 %v10526_v42 }
 0x659   : > { %8939 = vmatprep.subr.bf16.mxu1 %v9667_v60 }
 0x65f   : > { %8523 = vmatmul.mubr.f32.vlgmr.msra.gmra.mrb[4].mxu1 %v10535_v8 }
 0x660   : > { %8601 = vmatprep.mubr.msk.f32.mxu1 %vm9665_vm4, %v9664_v53 }
 0x66c   : > { %v4206_v19 = vpop.xlane.xlu1 %4205 }
 0x66d   : > { %v4207_v34 = vmul.f32 0.0625, %v4206_v19 }
 0x66f   : > { %v4208_v28 = vadd.f32 1e-05, %v4207_v34 }
 0x670   : > { %v4708_v16 = vpop.permute.xlu1 %4707 }
 0x671   : > { %9304 = vrsqrt.f32 %v4208_v28  ;;  %v4712_v35 = vsel %vm1769_vm5, %v4708_v16, 0 }
 0x672   : > { %v4715_v4 = vand.u32 4294901760, %v4712_v35 }
 0x674   : > { %v5163_v31 = vpop.permute.xlu1 %5162  ;;  %v4792_v43 = vsub.f32 %v4712_v35, %v4715_v4 }
 0x675   : > { %v5165_v51 = vmul.f32 %v5163_v31, %v5160_v17 }
 0x676   : > { %v4793_v40 = vand.u32 4294901760, %v4792_v43 }
 0x677   : > { %v5166_v18 = vsel %vm1769_vm5, %v5165_v51, 0.0 }
 0x678   : > { %5167 = vadd.xlane.f32.xlu1 %v5166_v18  ;;  %v4794_v46 = vsub.f32 %v4792_v43, %v4793_v40 }
 0x67a   : > { %v4795_v50 = vand.u32 4294901760, %v4794_v46 }
 0x67b   : > { %v9305_v20 = vpop.eup %9304 }
 0x67c   : > { %v4210_v22 = vmul.f32 %v9305_v20, %v10478_v14 }
 0x67e   : > { %v4217_v58 = vmul.f32 %v10593_v21, %v4210_v22 }
 0x680   : > { %v4224_v25 = vadd.f32 %v10601_v23, %v4217_v58 }
 0x682   : > { %v4236_v54 = vmul.f32 %v4234_v24, %v4224_v25 }
 0x684   : > { %v4238_v26 = vsel %vm1769_vm5, %v4236_v54, 0 }
 0x685   : > { %v4307_v15 = vand.u32 4294901760, %v4238_v26 }
 0x687   : > { %v4308_v29 = vsub.f32 %v4238_v26, %v4307_v15 }
 0x689   : > { %6084 = vrot.lane.b32.xlu1 %v6082_v27, %s9662_s14  ;;  %v4309_v14 = vand.u32 4294901760, %v4308_v29  ;;  %s7933_s14 = sshll.u32 %s11108_s24, 1 }
 0x68a   : > { %s7646_s27 = sadd.s32 %s7934_s8, %s7933_s14 }
 0x68b   : > { %v4310_v30 = vsub.f32 %v4308_v29, %v4309_v14  ;;  %s7935_s5 = sshll.u32 %s7646_s27, 7 }
 0x68d   : > { %v4311_v32 = vand.u32 4294901760, %v4310_v30 }
 0x68f   : > { %8530 = vmatmul.mubr.f32.vlgmr.msra.gmra.mrb[2].mxu0 %v4311_v32 }
 0x690   : > { %8926 = vmatpush3.bf16.msra.mxu0 %v10508_v59  ;;  %8536 = vmatprep.mubr.msk.f32.mxu0 %vm9665_vm4, %v9664_v53 }
 0x691   : > { %8927 = vmatprep.subr.bf16.mxu0 %v9667_v60 }
 0x693   : > { %8537 = vmatmul.mubr.f32.vlgmr.msra.gmra.mrb[4].mxu0 %v4307_v15 }
 0x694   : > { %8929 = vmatpush3.bf16.msra.mxu0 %v10515_v62  ;;  %8543 = vmatprep.mubr.msk.f32.mxu0 %vm9665_vm4, %v9664_v53 }
 0x695   : > { %8930 = vmatprep.subr.bf16.mxu0 %v9667_v60 }
 0x697   : > { %8544 = vmatmul.mubr.f32.vlgmr.msra.gmra.mrb[6].mxu0 %v4308_v29 }
 0x698   : > { %8932 = vmatpush3.bf16.msra.mxu0 %v10504_v49  ;;  %8550 = vmatprep.mubr.msk.f32.mxu0 %vm9665_vm4, %v9664_v53 }
 0x699   : > { %8933 = vmatprep.subr.bf16.mxu0 %v9667_v60 }
 0x69b   : > { %8551 = vmatmul.mubr.f32.vlgmr.msra.gmra.mrb[8].mxu0 %v4309_v14 }
 0x69c   : > { %8935 = vmatpush3.bf16.msra.mxu0 %v10524_v3  ;;  %8557 = vmatprep.mubr.msk.f32.mxu0 %vm9665_vm4, %v9664_v53 }
 0x69d   : > { %8936 = vmatprep.subr.bf16.mxu0 %v9667_v60 }
 0x69f   : > { %8558 = vmatmul.mubr.f32.vlgmr.msra.gmra.mrb[10].mxu0 %v4307_v15 }
 0x6a0   : > { %8938 = vmatpush3.bf16.msra.mxu0 %v10504_v49  ;;  %8564 = vmatprep.mubr.msk.f32.mxu0 %vm9665_vm4, %v9664_v53 }
 0x6a1   : > { %8567 = vmatprep.subr.mxu0 %v9664_v53 }
 0x6a3   : > { %8565 = vmatmul.mubr.f32.vlgmr.msra.gmra.mrb[12].mxu0 %v4307_v15 }
 0x6a4   : > { %8569 = vmatprep.mubr.msk.f32.mxu0 %vm9665_vm4, %v9664_v53 }
 0x6a9   : > { %8568 = vmatpush3.xpose.msra.mxu0 %v4715_v4 }
 0x6aa   : > { %8572 = vmatprep.subr.mxu0 %v9664_v53 }
 0x6ac   : > { %8570 = vmatmul.mubr.f32.vlgmr.msra.gmra.mrb[14].mxu0 %v4784_v47 }
 0x6ad   : > { %8573 = vmatpush3.xpose.msra.mxu0 %v4795_v50  ;;  %8574 = vmatprep.mubr.msk.f32.mxu0 %vm9665_vm4, %v9664_v53 }
 0x6ae   : > { %8577 = vmatprep.subr.mxu0 %v9664_v53 }
 0x6b4   : > { %8575 = vmatmul.mubr.f32.vlgmr.msra.gmra.mrb[14].mxu0 %v10624_v38 }
 0x6b5   : > { %8578 = vmatpush3.xpose.msra.mxu0 %v4792_v43  ;;  %8579 = vmatprep.mubr.msk.f32.mxu0 %vm9665_vm4, %v9664_v53 }
 0x6b6   : > { %8582 = vmatprep.subr.mxu0 %v9664_v53 }
 0x6bc   : > { %8580 = vmatmul.mubr.f32.vlgmr.msra.gmra.mrb[14].mxu0 %v10631_v41 }
 0x6bd   : > { %8583 = vmatpush3.xpose.msra.mxu0 %v4715_v4  ;;  %8584 = vmatprep.mubr.msk.f32.mxu0 %vm9665_vm4, %v9664_v53 }
 0x6be   : > { %8587 = vmatprep.subr.mxu0 %v9664_v53 }
 0x6c4   : > { %8585 = vmatmul.mubr.f32.vlgmr.msra.gmra.mrb[14].mxu0 %v10638_v45 }
 0x6c5   : > { %8588 = vmatpush3.xpose.msra.mxu0 %v4793_v40  ;;  %8589 = vmatprep.mubr.msk.f32.mxu0 %vm9665_vm4, %v9664_v53 }
 0x6c6   : > { %8592 = vmatprep.subr.mxu0 %v9664_v53 }
 0x6cc   : > { %8590 = vmatmul.mubr.f32.vlgmr.msra.gmra.mrb[14].mxu0 %v10624_v38 }
 0x6cd   : > { %8593 = vmatpush3.xpose.msra.mxu0 %v4715_v4  ;;  %8594 = vmatprep.mubr.msk.f32.mxu0 %vm9665_vm4, %v9664_v53 }
 0x6ce   : > { %8669 = vmatprep.subr.mxu0 %v10667_v61 }
 0x6d4   : > { %8595 = vmatmul.mubr.f32.vlgmr.msra.gmra.mrb[14].mxu0 %v10624_v38 }
 0x6d5   : > { %8670 = vmatpush3.msra.mxu0 %v10667_v61 }
 0x6d6   : > { %8674 = vmatprep.subr.mxu0 %v10679_v5 }
 0x705   : > { %v10665_v52 = vpop.xlane.xlu1 %5167 }
 0x709   : > { %v6085_v55 = vpop.permute.xlu1 %6084 }
 0x70a   : > { %6087 = vxpose.xlu1.b32.start.end [1/1] (short) (narrow) %v6085_v55, 16 }
 0x732   : > { %v8524_v7 = vpop.f32.mrb[4].mxu1 }
 0x733   : > { %v5175_v48 = vand.u32 4294901760, %v8524_v7  ;;  %v4186_v11 = vpop.f32.mrb[5].mxu1 }
 0x734   : > { %v5172_v19 = vand.u32 4294901760, %v4186_v11 }
 0x735   : > { %v5257_v34 = vsub.f32 %v8524_v7, %v5175_v48 }
 0x736   : > { %v10682_v28 = vpack.c.bf16 %v5175_v48, %v5172_v19  ;;  %v5250_v16 = vsub.f32 %v4186_v11, %v5172_v19 }
 0x737   : > { %v5258_v17 = vand.u32 4294901760, %v5257_v34 }
 0x738   : > { %v5251_v31 = vand.u32 4294901760, %v5250_v16  ;;  %v10684_v51 = vpack.c.bf16 %v5257_v34, %v5250_v16  ;;  %8941 = vmatpush3.bf16.msra.mxu1 %v10682_v28 }
 0x739   : > { %v5259_v18 = vsub.f32 %v5257_v34, %v5258_v17  ;;  %8942 = vmatprep.subr.bf16.mxu1 %v9667_v60 }
 0x73a   : > { %v5252_v20 = vsub.f32 %v5250_v16, %v5251_v31  ;;  %v10688_v22 = vpack.c.bf16 %v5258_v17, %v5251_v31 }
 0x73b   : > { %v5260_v58 = vand.u32 4294901760, %v5259_v18  ;;  %8602 = vmatmul.mubr.f32.vlgmr.msra.gmra.mrb[6].mxu1 %v4784_v47 }
 0x73c   : > { %v5253_v24 = vand.u32 4294901760, %v5252_v20  ;;  %8608 = vmatprep.mubr.msk.f32.mxu1 %vm9665_vm4, %v9664_v53  ;;  %v5169_v20 = vsel %vm2237_vm6, %v10665_v52, 0.0 }
 0x73e   : > { %v10692_v25 = vpack.c.bf16 %v5260_v58, %v5253_v24 }
 0x740   : > { %8944 = vmatpush3.bf16.msra.mxu1 %v10692_v25 }
 0x741   : > { %8945 = vmatprep.subr.bf16.mxu1 %v9667_v60 }
 0x743   : > { %8609 = vmatmul.mubr.f32.vlgmr.msra.gmra.mrb[6].mxu1 %v10624_v38 }
 0x744   : > { %8947 = vmatpush3.bf16.msra.mxu1 %v10684_v51  ;;  %8615 = vmatprep.mubr.msk.f32.mxu1 %vm9665_vm4, %v9664_v53 }
 0x745   : > { %8948 = vmatprep.subr.bf16.mxu1 %v9667_v60 }
 0x74b   : > { %8616 = vmatmul.mubr.f32.vlgmr.msra.gmra.mrb[6].mxu1 %v10631_v41 }
 0x74c   : > { %8950 = vmatpush3.bf16.msra.mxu1 %v10682_v28  ;;  %8622 = vmatprep.mubr.msk.f32.mxu1 %vm9665_vm4, %v9664_v53 }
 0x74d   : > { %8951 = vmatprep.subr.bf16.mxu1 %v9667_v60 }
 0x753   : > { %8623 = vmatmul.mubr.f32.vlgmr.msra.gmra.mrb[6].mxu1 %v10638_v45  ;;  %v4699_v45 = vld [vmem:[%s10292_s0] sm:$0xff] }
 0x754   : > { %8953 = vmatpush3.bf16.msra.mxu1 %v10688_v22  ;;  %8629 = vmatprep.mubr.msk.f32.mxu1 %vm9665_vm4, %v9664_v53 }
 0x755   : > { %8954 = vmatprep.subr.bf16.mxu1 %v9667_v60 }
 0x75b   : > { %8630 = vmatmul.mubr.f32.vlgmr.msra.gmra.mrb[6].mxu1 %v10624_v38 }
 0x75c   : > { %8956 = vmatpush3.bf16.msra.mxu1 %v10682_v28  ;;  %8636 = vmatprep.mubr.msk.f32.mxu1 %vm9665_vm4, %v9664_v53 }
 0x75d   : > { %8639 = vmatprep.subr.mxu1 %v9664_v53 }
 0x762   : > { %v4313_v54 = vpop.f32.mrb[2].mxu0 }
 0x763   : > { %v8531_v26 = vpop.f32.mrb[3].mxu0  ;;  %8637 = vmatmul.mubr.f32.vlgmr.msra.gmra.mrb[6].mxu1 %v10624_v38 }
 0x764   : > { %8640 = vmatpush3.msra.mxu1 %v10667_v61  ;;  %8641 = vmatprep.mubr.msk.f32.mxu1 %vm9665_vm4, %v9664_v53 }
 0x765   : > { %8644 = vmatprep.subr.mxu1 %v9664_v53 }
 0x766   : > { %v4394_v15 = vpop.f32.mrb[4].mxu0 }
 0x767   : > { %v4395_v27 = vadd.f32 %v4394_v15, %v4313_v54  ;;  %v8538_v29 = vpop.f32.mrb[5].mxu0 }
 0x76a   : > { %v4470_v14 = vpop.f32.mrb[6].mxu0 }
 0x76b   : > { %v4471_v30 = vadd.f32 %v4470_v14, %v4395_v27  ;;  %v8545_v32 = vpop.f32.mrb[7].mxu0 }
 0x76e   : > { %v4545_v33 = vpop.f32.mrb[8].mxu0 }
 0x76f   : > { %v4546_v37 = vadd.f32 %v4545_v33, %v4471_v30  ;;  %v8552_v35 = vpop.f32.mrb[9].mxu0 }
 0x772   : > { %v4622_v4 = vpop.f32.mrb[10].mxu0 }
 0x773   : > { %v4623_v38 = vadd.f32 %v4622_v4, %v4546_v37  ;;  %v8559_v41 = vpop.f32.mrb[11].mxu0 }
 0x776   : > { %v4695_v43 = vpop.f32.mrb[12].mxu0 }
 0x777   : > { %v4696_v40 = vadd.f32 %v4695_v43, %v4623_v38  ;;  %v8566_v0 = vpop.f32.mrb[13].mxu0 }
 0x779   : > { %v4700_v46 = vadd.f32 %v4699_v45, %v4696_v40 }
 0x77b   : > { %4701 = vst.msk [vmem:[%s10292_s0] sm:$0xff] %vm639_vm1, %v4700_v46 }
 0x78a   : > { %v6103_v47 = vpop.trf.xlu1 }
 0x78b   : > { %v6120_v50 = vsel %vm2702_vm8, %v6103_v47, 0 }
 0x78c   : > { %v6191_v55 = vand.u32 4294901760, %v6120_v50 }
 0x78e   : > { %v6192_v56 = vsub.f32 %v6120_v50, %v6191_v55  ;;  %v6104_v44 = vpop.trf.xlu1 }
 0x78f   : > { %v6123_v7 = vsel %vm2702_vm8, %v6104_v44, 0 }
 0x790   : > { %v6193_v48 = vand.u32 4294901760, %v6192_v56  ;;  %v6201_v11 = vand.u32 4294901760, %v6123_v7 }
 0x792   : > { %v6202_v19 = vsub.f32 %v6123_v7, %v6201_v11  ;;  %v6194_v34 = vsub.f32 %v6192_v56, %v6193_v48 }
 0x794   : > { %v6203_v16 = vand.u32 4294901760, %v6202_v19  ;;  %v6195_v17 = vand.u32 4294901760, %v6194_v34 }
 0x796   : > { %v6204_v31 = vsub.f32 %v6202_v19, %v6203_v16  ;;  %8671 = vmatprep.mubr.f32.mxu0 %v6195_v17 }
 0x798   : > { %v6205_v18 = vand.u32 4294901760, %v6204_v31 }
 0x79a   : > { %8672 = vmatmul.mubr.f32.vlgmr.msra.gmra.mrb[16].mxu0 %v6205_v18 }
 0x79b   : > { %8675 = vmatpush3.msra.mxu0 %v10679_v5  ;;  %8676 = vmatprep.mubr.f32.mxu0 %v6191_v55 }
 0x79c   : > { %8679 = vmatprep.subr.mxu0 %v10670_v57 }
 0x7a2   : > { %8677 = vmatmul.mubr.f32.vlgmr.msra.gmra.mrb[16].mxu0 %v6201_v11 }
 0x7a3   : > { %8680 = vmatpush3.msra.mxu0 %v10670_v57  ;;  %8681 = vmatprep.mubr.f32.mxu0 %v6192_v56 }
 0x7a4   : > { %8684 = vmatprep.subr.mxu0 %v10667_v61 }
 0x7a7   : > { %v5156_v58 = vpop.f32.mrb[14].mxu0 }
 0x7a8   : > { %v5170_v24 = vsel %vm2236_vm7, %v5156_v58, %v5169_v20  ;;  %v8596_v54 = vpop.f32.mrb[15].mxu0 }
 0x7a9   : > { %v5634_v26 = vsel %vm2702_vm8, %v5170_v24, 0 }
 0x7aa   : > { %v5702_v15 = vand.u32 4294901760, %v5634_v26  ;;  %8682 = vmatmul.mubr.f32.vlgmr.msra.gmra.mrb[16].mxu0 %v6202_v19 }
 0x7ab   : > { %8685 = vmatpush3.msra.mxu0 %v10667_v61  ;;  %8686 = vmatprep.mubr.f32.mxu0 %v6193_v48 }
 0x7ac   : > { %v5703_v27 = vsub.f32 %v5634_v26, %v5702_v15  ;;  %8689 = vmatprep.subr.mxu0 %v10675_v63 }
 0x7ae   : > { %v5704_v29 = vand.u32 4294901760, %v5703_v27 }
 0x7b0   : > { %v5705_v14 = vsub.f32 %v5703_v27, %v5704_v29 }
 0x7b2   : > { %8687 = vmatmul.mubr.f32.vlgmr.msra.gmra.mrb[16].mxu0 %v6203_v16  ;;  %v5706_v52 = vand.u32 4294901760, %v5705_v14 }
 0x7b3   : > { %8690 = vmatpush3.msra.mxu0 %v10675_v63  ;;  %8691 = vmatprep.mubr.f32.mxu0 %v6191_v55 }
 0x7b4   : > { %8642 = vmatmul.mubr.f32.vlgmr.msra.gmra.mrb[6].mxu1 %v5706_v52  ;;  %8694 = vmatprep.subr.mxu0 %v10667_v61 }
 0x7b5   : > { %8645 = vmatpush3.msra.mxu1 %v10679_v5  ;;  %8646 = vmatprep.mubr.msk.f32.mxu1 %vm9665_vm4, %v9664_v53 }
 0x7b6   : > { %8649 = vmatprep.subr.mxu1 %v9664_v53 }
 0x7ba   : > { %8692 = vmatmul.mubr.f32.vlgmr.msra.gmra.mrb[16].mxu0 %v6201_v11 }
 0x7bb   : > { %8695 = vmatpush3.msra.mxu0 %v10667_v61  ;;  %8696 = vmatprep.mubr.f32.mxu0 %v6191_v55 }
 0x7bc   : > { %8647 = vmatmul.mubr.f32.vlgmr.msra.gmra.mrb[6].mxu1 %v5702_v15  ;;  %8958 = vmatprep.subr.bf16.mxu0 %v10682_v28 }
 0x7bd   : > { %8650 = vmatpush3.msra.mxu1 %v10670_v57  ;;  %8651 = vmatprep.mubr.msk.f32.mxu1 %vm9665_vm4, %v9664_v53 }
 0x7be   : > { %8654 = vmatprep.subr.mxu1 %v9664_v53 }
 0x7c2   : > { %8697 = vmatmul.mubr.f32.vlgmr.msra.gmra.mrb[16].mxu0 %v6201_v11 }
 0x7c3   : > { %8960 = vmatpush3.bf16.msra.mxu0 %v10682_v28  ;;  %8703 = vmatprep.mubr.f32.mxu0 %v10552_v13 }
 0x7c4   : > { %8652 = vmatmul.mubr.f32.vlgmr.msra.gmra.mrb[6].mxu1 %v5703_v27  ;;  %8962 = vmatprep.subr.bf16.mxu0 %v10692_v25 }
 0x7c5   : > { %8655 = vmatpush3.msra.mxu1 %v10667_v61  ;;  %8656 = vmatprep.mubr.msk.f32.mxu1 %vm9665_vm4, %v9664_v53 }
 0x7c6   : > { %8659 = vmatprep.subr.mxu1 %v9664_v53 }
 0x7ca   : > { %8704 = vmatmul.mubr.f32.vlgmr.msra.gmra.mrb[16].mxu0 %v10560_v36 }
 0x7cb   : > { %8964 = vmatpush3.bf16.msra.mxu0 %v10692_v25  ;;  %8710 = vmatprep.mubr.f32.mxu0 %v10526_v42 }
 0x7cc   : > { %8657 = vmatmul.mubr.f32.vlgmr.msra.gmra.mrb[6].mxu1 %v5704_v29  ;;  %8966 = vmatprep.subr.bf16.mxu0 %v10684_v51 }
 0x7cd   : > { %8660 = vmatpush3.msra.mxu1 %v10675_v63  ;;  %8661 = vmatprep.mubr.msk.f32.mxu1 %vm9665_vm4, %v9664_v53 }
 0x7ce   : > { %8664 = vmatprep.subr.mxu1 %v9664_v53 }
 0x7d2   : > { %8711 = vmatmul.mubr.f32.vlgmr.msra.gmra.mrb[16].mxu0 %v10535_v8 }
 0x7d3   : > { %8968 = vmatpush3.bf16.msra.mxu0 %v10684_v51  ;;  %8717 = vmatprep.mubr.f32.mxu0 %v10531_v6 }
 0x7d4   : > { %8662 = vmatmul.mubr.f32.vlgmr.msra.gmra.mrb[6].mxu1 %v5702_v15  ;;  %8970 = vmatprep.subr.bf16.mxu0 %v10682_v28 }
 0x7d5   : > { %8665 = vmatpush3.msra.mxu1 %v10667_v61  ;;  %8666 = vmatprep.mubr.msk.f32.mxu1 %vm9665_vm4, %v9664_v53 }
 0x7d6   : > { %8981 = vmatprep.subr.bf16.mxu1 %v9667_v60 }
 0x7da   : > { %8718 = vmatmul.mubr.f32.vlgmr.msra.gmra.mrb[16].mxu0 %v10542_v9  ;;  %v7926_v9 = vmul.f32 -1.442695, %v10474_v12 }
 0x7db   : > { %8972 = vmatpush3.bf16.msra.mxu0 %v10682_v28  ;;  %8724 = vmatprep.mubr.f32.mxu0 %v10538_v2 }
 0x7dc   : > { %8667 = vmatmul.mubr.f32.vlgmr.msra.gmra.mrb[6].mxu1 %v5702_v15  ;;  %8974 = vmatprep.subr.bf16.mxu0 %v10688_v22  ;;  %9306 = vpow2.f32 %v7926_v9 }
 0x7dd   : > { %8983 = vmatpush3.bf16.msra.mxu1 %v10504_v49  ;;  %8745 = vmatprep.mubr.msk.f32.mxu1 %vm9665_vm4, %v9664_v53 }
 0x7de   : > { %8984 = vmatprep.subr.bf16.mxu1 %v9667_v60 }
 0x7e2   : > { %8725 = vmatmul.mubr.f32.vlgmr.msra.gmra.mrb[16].mxu0 %v10550_v10 }
 0x7e3   : > { %8976 = vmatpush3.bf16.msra.mxu0 %v10688_v22  ;;  %8731 = vmatprep.mubr.f32.mxu0 %v10526_v42 }
 0x7e4   : > { %8978 = vmatprep.subr.bf16.mxu0 %v10682_v28 }
 0x7e6   : > { %v9307_v57 = vpop.eup %9306 }
 0x7ea   : > { %8732 = vmatmul.mubr.f32.vlgmr.msra.gmra.mrb[16].mxu0 %v10535_v8 }
 0x7eb   : > { %8980 = vmatpush3.bf16.msra.mxu0 %v10682_v28  ;;  %8738 = vmatprep.mubr.f32.mxu0 %v10526_v42 }
 0x7f2   : > { %8739 = vmatmul.mubr.f32.vlgmr.msra.gmra.mrb[16].mxu0 %v10535_v8  ;;  %v7135_v8 = vadd.f32 1.0, %v9307_v57 }
 0x7f4   : > { %9308 = vrcp.f32 %v7135_v8 }
 0x7fe   : > { %v9309_v63 = vpop.eup %9308 }
 0x7ff   : > { %v7138_v5 = vmul.f32 %v9309_v63, %v10474_v12 }
 0x8af   : > { %v6078_v1 = vpop.f32.mrb[6].mxu1 }
 0x8b0   : > { %v7116_v39 = vmul.f32 0.125, %v6078_v1  ;;  %v8668_v6 = vpop.f32.mrb[7].mxu1 }
 0x8b2   : > { %v7117_v2 = vsel %vm1769_vm5, %v7116_v39, 0.0 }
 0x8b3   : > { %7118 = vadd.xlane.f32.xlu0 %v7117_v2 }
 0x8c5   : > { %v8740_v28 = vpop.f32.mrb[16].mxu0 }
 0x8c6   : > { %7611 = vst.msk [vmem:[%s10295_s6 + $0x8] sm:$0xff] %vm1769_vm5, %v8740_v28  ;;  %v7106_v51 = vpop.f32.mrb[17].mxu0 }
 0x8c7   : > { %7610 = vst.msk [vmem:[%s10295_s6] sm:$0xff] %vm1769_vm5, %v7106_v51  ;;  %s9466_s6 = sshll.u32 %s9669_s18, 4  ;;  %s9467_s6 = int_to_ptr.vmem [resolvable:$false] %s9466_s6 }
 0x8c8   : > { %s9468_s3 = scalar_lea.vmem %s9467_s6, 512  ;;  %p9469_p9 = scmp.lt.s32.totalorder %s10830_s11, %s9467_s6 }
 0x8c9   : > { %p9470_p12 = scmp.lt.s32.totalorder %s9468_s3, %s9462_s16 }
 0x8cb   : > { %p9471_p8 = por %p9470_p12, %p9469_p9 }
 0x8cd   : > { %p9472_p2 = pnand %p9471_p8, %p9465_p0 }
 0x940   : > { %v7119_v10 = vpop.xlane.xlu0 %7118 }
 0x941   : > { %v7120_v13 = vmul.f32 0.0625, %v7119_v10 }
 0x943   : > { %v7121_v36 = vsub.f32 %v7116_v39, %v7120_v13 }
 0x945   : > { %v7122_v61 = vmul.f32 %v7121_v36, %v7121_v36 }
 0x947   : > { %v7123_v42 = vsel %vm1769_vm5, %v7122_v61, 0.0 }
 0x948   : > { %7124 = vadd.xlane.f32.xlu0 %v7123_v42 }
 0x95e   : > { %7140 = vrot.lane.b32.xlu0 %v7138_v5, %s9668_s22  ;;  %s10828_s22 = scalar_lea.hbm %s11112_s7, %s7935_s5 }
 0x9d5   : > { %v7125_v22 = vpop.xlane.xlu0 %7124 }
 0x9d6   : > { %v7126_v25 = vmul.f32 0.0625, %v7125_v22 }
 0x9d8   : > { %v7127_v30 = vadd.f32 1e-05, %v7126_v25 }
 0x9d9   : > { %v7141_v35 = vpop.permute.xlu0 %7140 }
 0x9da   : > { %9310 = vrsqrt.f32 %v7127_v30 }
 0x9e4   : > { %v9311_v32 = vpop.eup %9310 }
 0x9e5   : > { %v7129_v33 = vmul.f32 %v9311_v32, %v7121_v36 }
 0x9e7   : > { %v7130_v37 = vmul.f32 %v10593_v21, %v7129_v33 }
 0x9e9   : > { %v7131_v4 = vadd.f32 %v10601_v23, %v7130_v37 }
 0x9eb   : > { %v7143_v12 = vmul.f32 %v7141_v35, %v7131_v4 }
 0x9ed   : > { %v7145_v38 = vsel %vm1769_vm5, %v7143_v12, 0 }
 0x9ee   : > { %v7214_v41 = vand.u32 4294901760, %v7145_v38 }
 0x9f0   : > { %v7215_v43 = vsub.f32 %v7145_v38, %v7214_v41 }
 0x9f2   : > { %v7216_v45 = vand.u32 4294901760, %v7215_v43 }
 0x9f4   : > { %v7217_v40 = vsub.f32 %v7215_v43, %v7216_v45 }
 0x9f6   : > { %v7218_v0 = vand.u32 4294901760, %v7217_v40 }
 0x9f8   : > { %8746 = vmatmul.mubr.f32.vlgmr.msra.gmra.mrb[8].mxu1 %v7218_v0 }
 0x9f9   : > { %8986 = vmatpush3.bf16.msra.mxu1 %v10508_v59  ;;  %8752 = vmatprep.mubr.msk.f32.mxu1 %vm9665_vm4, %v9664_v53 }
 0x9fa   : > { %8987 = vmatprep.subr.bf16.mxu1 %v9667_v60 }
 0x9fc   : > { %8753 = vmatmul.mubr.f32.vlgmr.msra.gmra.mrb[10].mxu1 %v7214_v41 }
 0x9fd   : > { %8989 = vmatpush3.bf16.msra.mxu1 %v10515_v62  ;;  %8759 = vmatprep.mubr.msk.f32.mxu1 %vm9665_vm4, %v9664_v53 }
 0x9fe   : > { %8990 = vmatprep.subr.bf16.mxu1 %v9667_v60 }
 0xa00   : > { %8760 = vmatmul.mubr.f32.vlgmr.msra.gmra.mrb[12].mxu1 %v7215_v43 }
 0xa01   : > { %8992 = vmatpush3.bf16.msra.mxu1 %v10504_v49  ;;  %8766 = vmatprep.mubr.msk.f32.mxu1 %vm9665_vm4, %v9664_v53 }
 0xa02   : > { %8993 = vmatprep.subr.bf16.mxu1 %v9667_v60 }
 0xa04   : > { %8767 = vmatmul.mubr.f32.vlgmr.msra.gmra.mrb[14].mxu1 %v7216_v45 }
 0xa05   : > { %8995 = vmatpush3.bf16.msra.mxu1 %v10524_v3  ;;  %8773 = vmatprep.mubr.msk.f32.mxu1 %vm9665_vm4, %v9664_v53 }
 0xa06   : > { %8996 = vmatprep.subr.bf16.mxu1 %v9667_v60 }
 0xa08   : > { %8774 = vmatmul.mubr.f32.vlgmr.msra.gmra.mrb[16].mxu1 %v7214_v41 }
 0xa09   : > { %8998 = vmatpush3.bf16.msra.mxu1 %v10504_v49  ;;  %8780 = vmatprep.mubr.msk.f32.mxu1 %vm9665_vm4, %v9664_v53 }
 0xa0c   : > { %8781 = vmatmul.mubr.f32.vlgmr.msra.gmra.mrb[18].mxu1 %v7214_v41 }
 0xa0d   : > { %9475 = shalt.err (!%p9472_p2)
}
 0xa0e   : > { %s9476_s2 = scalar_lea.hbm %s10828_s22, 256  ;;  %s9480_s24 = scalar_lea.hbm %s11112_s7, 1024 }
 0xa0f   : > { %p9477_p1 = scmp.ne.s32.totalorder %s10828_s22, %s9476_s2  ;;  %p9481_p3 = scmp.lt.u32.totalorder %s10828_s22, %s11112_s7 }
 0xa10   : > { %p9482_p4 = scmp.lt.u32.totalorder %s9480_s24, %s9476_s2  ;;  %p9484_p6 = scmp.lt.u32.totalorder %s9476_s2, %s10828_s22 }
 0xa11   : > { %p9478_p11 = pnand %p9477_p1, %p11114_p10 }
 0xa12   : > { %p9483_p13 = por %p9482_p4, %p9481_p3 }
 0xa13   : > { %p9479_p7 = pneg %p9478_p11 }
 0xa14   : > { %p9485_p5 = por %p9484_p6, %p9483_p13 }
 0xa16   : > { %p9486_p0 = pnand %p9485_p5, %p9479_p7 }
 0xa18   : > { %9489 = shalt.err (!%p9486_p0)
}
 0xa19   : > { %s9670_s8 = smov 128   ;;  %s9671_s27 = smov 8   ;;  %v7927_v48 = vld [vmem:[%s10292_s0 + $0x8] sm:$0xff] }
 0xa1a   : > { %9140 = dma.vmem_to_hbm [thread:$0]  (%p11114_p10), %s10830_s11, 256, %s10828_s22, %s10834_s15, %s9670_s8, %s9670_s8, %s9671_s27  }
 0xa1b   : > { %s7942_s4 = sshll.u32 %s11109_s9, 8  ;;  %s7631_s5 = sshll.u32 %s10292_s0, 4  ;;  %s10869_s5 = int_to_ptr.vmem [resolvable:$true] %s7631_s5 }
 0xa1c   : > { %s11115_s25 = sld [smem:[#allocation50_spill]]  ;;  %s7613_s13 = scalar_lea.sflag [#allocation5], %s10153_s1 }
 0xa1d   : > { %s9490_s15 = scalar_lea.vmem %s10869_s5, 256  ;;  %p11117_p9 = scmp.ne.s32.totalorder %s11070_s28, 0 }
 0xa1e   : > { %p9491_p10 = scmp.ne.s32.totalorder %s10869_s5, %s9490_s15  ;;  %s9672_s9 = smov [#allocation12]  }
 0xa1f   : > { %s9494_s16 = sshll.u32 %s9672_s9, 4  ;;  %s9495_s16 = int_to_ptr.vmem [resolvable:$false] %s9494_s16 }
 0xa20   : > { %p9492_p12 = pnand %p9491_p10, %p11117_p9  ;;  %s9496_s18 = scalar_lea.vmem %s9495_s16, 512 }
 0xa21   : > { %p9497_p2 = scmp.lt.s32.totalorder %s10869_s5, %s9495_s16  ;;  %p9498_p1 = scmp.lt.s32.totalorder %s9496_s18, %s9490_s15 }
 0xa22   : > { %s11116_s6 = smov %s11115_s25  ;;  %s10867_s22 = scalar_lea.hbm %s11115_s25, %s7942_s4 }
 0xa23   : > { %p9493_p8 = pneg %p9492_p12  ;;  %p9499_p11 = por %p9498_p1, %p9497_p2 }
 0xa25   : > { %p9500_p7 = pnand %p9499_p11, %p9493_p8 }
 0xacb   : > { %v7220_v53 = vpop.f32.mrb[8].mxu1 }
 0xacc   : > { %v8747_v60 = vpop.f32.mrb[9].mxu1 }
 0xacf   : > { %v7301_v49 = vpop.f32.mrb[10].mxu1 }
 0xad0   : > { %v7302_v59 = vadd.f32 %v7301_v49, %v7220_v53  ;;  %v8754_v62 = vpop.f32.mrb[11].mxu1 }
 0xad3   : > { %v7377_v3 = vpop.f32.mrb[12].mxu1 }
 0xad4   : > { %v7378_v21 = vadd.f32 %v7377_v3, %v7302_v59  ;;  %v8761_v23 = vpop.f32.mrb[13].mxu1 }
 0xad7   : > { %v7452_v46 = vpop.f32.mrb[14].mxu1 }
 0xad8   : > { %v7453_v47 = vadd.f32 %v7452_v46, %v7378_v21  ;;  %v8768_v50 = vpop.f32.mrb[15].mxu1 }
 0xadb   : > { %v7529_v55 = vpop.f32.mrb[16].mxu1 }
 0xadc   : > { %v7530_v56 = vadd.f32 %v7529_v55, %v7453_v47  ;;  %v8775_v44 = vpop.f32.mrb[17].mxu1 }
 0xadf   : > { %v7602_v7 = vpop.f32.mrb[18].mxu1 }
 0xae0   : > { %v7603_v11 = vadd.f32 %v7602_v7, %v7530_v56  ;;  %v8782_v19 = vpop.f32.mrb[19].mxu1 }
 0xae2   : > { %v7608_v34 = vadd.f32 %v7927_v48, %v7603_v11 }
 0xae4   : > { %7928 = vst.msk [vmem:[%s10292_s0 + $0x8] sm:$0xff] %vm639_vm1, %v7608_v34 }
 0xae5   : > { %9503 = shalt.err (!%p9500_p7)
}
 0xae6   : > { %s9504_s0 = scalar_lea.hbm %s10867_s22, 256  ;;  %s9508_s29 = scalar_lea.hbm %s11116_s6, 512 }
 0xae7   : > { %p9505_p3 = scmp.ne.s32.totalorder %s10867_s22, %s9504_s0  ;;  %p9509_p6 = scmp.lt.u32.totalorder %s10867_s22, %s11116_s6 }
 0xae8   : > { %p9510_p5 = scmp.lt.u32.totalorder %s9508_s29, %s9504_s0  ;;  %p9512_p10 = scmp.lt.u32.totalorder %s9504_s0, %s10867_s22 }
 0xae9   : > { %p9506_p4 = pnand %p9505_p3, %p11117_p9 }
 0xaea   : > { %p9511_p0 = por %p9510_p5, %p9509_p6 }
 0xaeb   : > { %p9507_p13 = pneg %p9506_p4 }
 0xaec   : > { %p9513_p12 = por %p9512_p10, %p9511_p0 }
 0xaee   : > { %p9514_p8 = pnand %p9513_p12, %p9507_p13 }
 0xaf0   : > { %9517 = shalt.err (!%p9514_p8)
}
 0xaf1   : > { %9139 = dma.vmem_to_hbm [thread:$0]  (%p11117_p9), %s10869_s5, 256, %s10867_s22, %s7613_s13, %s9670_s8, %s9670_s8, %s9671_s27  }
 0xaf2 PF: > { %p9167_p2 = scmp.ge.s32.totalorder %s9652_s26, 2  ;;  %s7664_s17 = sand.u32 1, %s9624_s19  }
 0xaf3   : > { %p11118_p1 = scmp.ne.s32.totalorder %s11073_s23, 0  ;;  %s7665_s14 = scalar_lea.sflag [#allocation5], %s7664_s17 }
 0xaf5   : > { %p9160_p11 = pnand %p9167_p2, %p11118_p1 }
 0xaf7   : > { %9591 = dma.done.wait (!%p9160_p11), %s7665_s14, 256  }
 0xaf8   : > { %9593 = vsyncadd (!%p9160_p11), %s7665_s14, 4294967040  ;;  %s11119_s28 = sld [smem:[#allocation21_spill]]  ;;  %p11120_p7 = scmp.ne.s32.totalorder %s11059_s10, 0 }
 0xafa   : > { %p9163_p3 = pnand %p9167_p2, %p11120_p7 }
 0xafe   : > { %s7673_s4 = sand.u32 1, %s11119_s28  }
 0xaff   : > { %s7674_s1 = scalar_lea.sflag [#allocation14], %s7673_s4 }
 0xb00   : > { %9595 = dma.done.wait (!%p9163_p3), %s7674_s1, 256  }
 0xb01   : > { %9597 = vsyncadd (!%p9163_p3), %s7674_s1, 4294967040  ;;  %s36_s26 = sadd.s32 1, %s9652_s26   ;;  %s11122_s13 = sld [smem:[#allocation22_spill]] }
 0xb02   : > { %p10908_p9 = scmp.ge.s32.totalorder %s36_s26, 6   ;;  %s11123_s14 = sld [smem:[#allocation23_spill]] }
 0xb03   : > { %s11124_s15 = sld [smem:[#allocation39_spill]]  ;;  %s11125_s16 = sld [smem:[#allocation24_spill]] }
 0xb04   : > { %s11126_s17 = sld [smem:[#allocation25_spill]]  ;;  %s11127_s18 = sld [smem:[#allocation31_spill]] }
 0xb05   : > { %s11128_s23 = sld [smem:[#allocation40_spill]]  ;;  %s11129_s22 = sld [smem:[#allocation28_spill]] }
 0xb06   : > { %s11130_s10 = sld [smem:[#allocation29_spill]]  ;;  %s11131_s24 = sld [smem:[#allocation30_spill]] }
 0xb07   : > { %s11132_s25 = sld [smem:[#allocation36_spill]]  ;;  %s11133_s19 = smov %s9628_s20 }
 0xb08   : > { %s11134_s20 = smov %s9632_s21  ;;  %35 = sbr.rel (!%p10908_p9) target bundleno = 28 (0x1c), region = 184 }
 0xb0b   : > { %s11135_s21 = smov %s11128_s23 }
 0xb0c   : > { %s11136_s23 = smov %s11130_s10 }
 0xb0f   :  { %7679 = vsyncpa [#allocation4], 1 }
 0xb10   :  { %7681 = vsyncpa [#allocation4 + $0x1], 1 }
 0xb11   :  { %7682 = vsyncpa [#allocation7], 1 }
 0xb12   :  { %7684 = vsyncpa [#allocation7 + $0x1], 1 }
 0xb13   :  { %7685 = vsyncpa [#allocation10], 1 }
 0xb14   :  { %7687 = vsyncpa [#allocation10 + $0x1], 1 }
 0xb15   :  { %7688 = vsyncpa [#allocation5], 1 }
 0xb16   :  { %7690 = vsyncpa [#allocation5 + $0x1], 1 }
 0xb17   :  { %7691 = vsyncpa [#allocation14], 1 }
 0xb18   :  { %7693 = vsyncpa [#allocation14 + $0x1], 1 }

</bundles_post_ra>
